<compile_context>
chip_gen: v5e
topology: v5e:2x2
jax: 0.10.0
libtpu: 0.0.40
codegen_flags: <defaults>
</compile_context>

<pallas_src>
import jax
import jax.numpy as jnp
from jax import lax
from jax.experimental import pallas as pl
from jax.experimental.pallas import tpu as pltpu


def decoder_kernel(xp_ref,      # (Tc, B, 4D) VMEM: precomputed x@Wih0^T + b0, time-major chunk
                   whh0_ref,    # (D, 4D)     VMEM: W_hh0^T
                   w1_ref,      # (2D, 4D)    VMEM: stacked [W_ih1^T ; W_hh1^T]
                   b1_ref,      # (1, 4D)     VMEM: b_ih1 + b_hh1
                   wlin_ref,    # (T_pad,)    SMEM: Linear(n_frame,1).weight
                   blin_ref,    # (1,)        SMEM: Linear bias
                   out_ref,     # (B, D)      VMEM: accumulator, resident across chunks
                   h0_ref, c0_ref, h1_ref, c1_ref):   # VMEM scratch (B, D): carried state
    Tc, B, D4 = xp_ref.shape
    D = D4 // 4
    chunk = pl.program_id(0)

    @pl.when(chunk == 0)
    def _init():
        z = jnp.zeros((B, D), jnp.float32)
        h0_ref[...] = z
        c0_ref[...] = z
        h1_ref[...] = z
        c1_ref[...] = z
        out_ref[...] = z

    # Hoist loop-invariant loads / broadcasts out of the serial time loop.
    whh0 = whh0_ref[...]
    w1 = w1_ref[...]
    b1 = jnp.broadcast_to(b1_ref[...], (B, D4))
    t0 = chunk * Tc

    def act(gates, c_prev):
        i = jax.nn.sigmoid(gates[:, 0 * D:1 * D])
        f = jax.nn.sigmoid(gates[:, 1 * D:2 * D])
        g = jnp.tanh(gates[:, 2 * D:3 * D])
        o = jax.nn.sigmoid(gates[:, 3 * D:4 * D])
        c_new = f * c_prev + i * g
        h_new = o * jnp.tanh(c_new)
        return h_new, c_new

    def step(t, carry):
        h0, c0, h1, c1, acc = carry
        # Layer 0: input projection precomputed -> only the recurrent matmul
        # remains on the serial dependence chain.
        g0 = xp_ref[t] + jnp.dot(h0, whh0, preferred_element_type=jnp.float32)
        h0, c0 = act(g0, c0)
        # Layer 1: single fused MXU push  [x1 | h1] @ [W_ih1^T ; W_hh1^T] + b1.
        xh = jnp.concatenate([h0, h1], axis=1)                  # (B, 2D)
        g1 = jnp.dot(xh, w1, preferred_element_type=jnp.float32) + b1
        h1, c1 = act(g1, c1)
        # Fused Linear(n_frame, 1) over the frame axis.
        acc = acc + h1 * wlin_ref[t0 + t]
        return (h0, c0, h1, c1, acc)

    carry0 = (h0_ref[...], c0_ref[...], h1_ref[...], c1_ref[...], out_ref[...])
    unroll = Tc if Tc <= 16 else 8
    h0, c0, h1, c1, acc = lax.fori_loop(0, Tc, step, carry0, unroll=unroll)

    h0_ref[...] = h0
    c0_ref[...] = c0
    h1_ref[...] = h1
    c1_ref[...] = c1
    out_ref[...] = acc

    @pl.when(chunk == pl.num_programs(0) - 1)
    def _finalize():
        out_ref[...] = out_ref[...] + blin_ref[0]


@jax.jit
def decoder_forward(X, params):
    """X: (B, T, D) float32 -> (B, 1, D) float32 (matches PyTorch Decoder)."""
    B, T, D = X.shape
    (w_ih0, w_hh0, b_ih0, b_hh0,
     w_ih1, w_hh1, b_ih1, b_hh1,
     w_lin, b_lin) = params

    # Hoist the layer-0 input projection for ALL timesteps into one big MXU
    # matmul; 'btd,df->tbf' also yields the time-major layout for free.
    b0 = b_ih0 + b_hh0                                            # (4D,)
    xp = jnp.einsum('btd,df->tbf', X, w_ih0.T,
                    preferred_element_type=jnp.float32) + b0      # (T, B, 4D)

    whh0_t = w_hh0.T                                              # (D, 4D)
    w1 = jnp.concatenate([w_ih1.T, w_hh1.T], axis=0)              # (2D, 4D)
    b1 = (b_ih1 + b_hh1).reshape(1, 4 * D)
    wlin = w_lin.reshape(T)
    blin = b_lin.reshape(1)

    # Chunk the frame axis so the projected input streams HBM->VMEM while the
    # recurrent state stays resident in VMEM scratch across grid iterations.
    Tc = min(T, 64)
    n_chunks = -(-T // Tc)
    T_pad = n_chunks * Tc
    if T_pad != T:
        # Zero-padded steps contribute nothing: their linear weight is 0.
        xp = jnp.pad(xp, ((0, T_pad - T), (0, 0), (0, 0)))
        wlin = jnp.pad(wlin, (0, T_pad - T))

    smem_full = pl.BlockSpec(memory_space=pltpu.MemorySpace.SMEM)

    out = pl.pallas_call(
        decoder_kernel,
        out_shape=jax.ShapeDtypeStruct((B, D), jnp.float32),
        grid=(n_chunks,),
        in_specs=[
            pl.BlockSpec((Tc, B, 4 * D), lambda c: (c, 0, 0)),    # streamed chunk
            pl.BlockSpec((D, 4 * D), lambda c: (0, 0)),           # resident weights
            pl.BlockSpec((2 * D, 4 * D), lambda c: (0, 0)),
            pl.BlockSpec((1, 4 * D), lambda c: (0, 0)),
            smem_full,                                            # wlin (T_pad,)
            smem_full,                                            # blin (1,)
        ],
        out_specs=pl.BlockSpec((B, D), lambda c: (0, 0)),         # resident accumulator
        scratch_shapes=[pltpu.VMEM((B, D), jnp.float32)] * 4,
        compiler_params=pltpu.CompilerParams(
            dimension_semantics=("arbitrary",)),
    )(xp, whh0_t, w1, b1, wlin, blin)

    return out.reshape(B, 1, D)


def init_params(key, d_model, n_frame):
    """Deterministic synthetic params matching nn.LSTM / nn.Linear shapes."""
    D = d_model
    ks = jax.random.split(key, 10)
    s = 1.0 / jnp.sqrt(jnp.float32(D))
    u = lambda k, shape: jax.random.uniform(k, shape, jnp.float32, -s, s)
    w_ih0 = u(ks[0], (4 * D, D))
    w_hh0 = u(ks[1], (4 * D, D))
    b_ih0 = u(ks[2], (4 * D,))
    b_hh0 = u(ks[3], (4 * D,))
    w_ih1 = u(ks[4], (4 * D, D))
    w_hh1 = u(ks[5], (4 * D, D))
    b_ih1 = u(ks[6], (4 * D,))
    b_hh1 = u(ks[7], (4 * D,))
    sl = 1.0 / jnp.sqrt(jnp.float32(n_frame))
    w_lin = jax.random.uniform(ks[8], (1, n_frame), jnp.float32, -sl, sl)
    b_lin = jax.random.uniform(ks[9], (1,), jnp.float32, -sl, sl)
    return (w_ih0, w_hh0, b_ih0, b_hh0,
            w_ih1, w_hh1, b_ih1, b_hh1,
            w_lin, b_lin)


def decoder_reference(X, params):
    """Pure-JAX reference of the PyTorch Decoder forward (for verification)."""
    (w_ih0, w_hh0, b_ih0, b_hh0,
     w_ih1, w_hh1, b_ih1, b_hh1,
     w_lin, b_lin) = params
    B, T, D = X.shape

    def cell(x_t, h, c, w_ih, w_hh, bi, bh):
        g = x_t @ w_ih.T + bi + h @ w_hh.T + bh
        i = jax.nn.sigmoid(g[:, 0 * D:1 * D])
        f = jax.nn.sigmoid(g[:, 1 * D:2 * D])
        gg = jnp.tanh(g[:, 2 * D:3 * D])
        o = jax.nn.sigmoid(g[:, 3 * D:4 * D])
        c = f * c + i * gg
        h = o * jnp.tanh(c)
        return h, c

    h0 = c0 = h1 = c1 = jnp.zeros((B, D), jnp.float32)
    outs = []
    for t in range(T):
        h0, c0 = cell(X[:, t, :], h0, c0, w_ih0, w_hh0, b_ih0, b_hh0)
        h1, c1 = cell(h0, h1, c1, w_ih1, w_hh1, b_ih1, b_hh1)
        outs.append(h1)
    lstm_out = jnp.stack(outs, axis=1)                            # (B, T, D)
    y = jnp.einsum("btd,t->bd", lstm_out, w_lin[0]) + b_lin[0]    # Linear over T
    return y.reshape(B, 1, D)


if __name__ == "__main__":
    d_model = 32
    n_frame = 8
    batch = 2

    key = jax.random.PRNGKey(0)
    kx, kp = jax.random.split(key)
    X = jax.random.normal(kx, (batch, n_frame, d_model), jnp.float32)
    params = init_params(kp, d_model, n_frame)

    out = decoder_forward(X, params)
    out = jax.block_until_ready(out)

    ref = decoder_reference(X, params)
    assert out.shape == (batch, 1, d_model), out.shape
    assert jnp.allclose(out, ref, rtol=1e-4, atol=1e-4), \
        float(jnp.max(jnp.abs(out - ref)))

    print("KERNEL_OK")
</pallas_src>

<mosaic_0001>
module attributes {stable_mosaic.version = 11 : i64} {
  func.func @decoder_kernel(%arg0: i32, %arg1: memref<8x2x128xf32, #tpu.memory_space<vmem>>, %arg2: memref<32x128xf32, #tpu.memory_space<vmem>>, %arg3: memref<64x128xf32, #tpu.memory_space<vmem>>, %arg4: memref<1x128xf32, #tpu.memory_space<vmem>>, %arg5: memref<8xf32, #tpu.memory_space<smem>>, %arg6: memref<1xf32, #tpu.memory_space<smem>>, %arg7: memref<2x32xf32, #tpu.memory_space<vmem>>, %arg8: memref<2x32xf32, #tpu.memory_space<vmem>>, %arg9: memref<2x32xf32, #tpu.memory_space<vmem>>, %arg10: memref<2x32xf32, #tpu.memory_space<vmem>>, %arg11: memref<2x32xf32, #tpu.memory_space<vmem>>) attributes {dimension_semantics = [#tpu.dimension_semantics<arbitrary>], iteration_bounds = array<i64: 1>, scalar_prefetch = 0 : i64, scratch_operands = 4 : i64, tpu.core_type = #tpu.core_type<tc>, window_params = [{transform_indices = @transform_0, window_bounds = array<i64: 8, 2, 128>}, {pipeline_mode = #tpu.pipeline_mode<synchronous>, transform_indices = @transform_1, window_bounds = array<i64: 32, 128>}, {pipeline_mode = #tpu.pipeline_mode<synchronous>, transform_indices = @transform_2, window_bounds = array<i64: 64, 128>}, {pipeline_mode = #tpu.pipeline_mode<synchronous>, transform_indices = @transform_3, window_bounds = array<i64: 1, 128>}, {transform_indices = @transform_4, window_bounds = array<i64: 8>}, {transform_indices = @transform_5, window_bounds = array<i64: 1>}, {pipeline_mode = #tpu.pipeline_mode<synchronous>, transform_indices = @transform_6, window_bounds = array<i64: 2, 32>}]} {
    %c0_i32 = arith.constant 0 : i32
    %0 = arith.cmpi eq, %arg0, %c0_i32 : i32
    %1 = arith.extui %0 : i1 to i32
    %c0_i32_0 = arith.constant 0 : i32
    %2 = arith.cmpi ne, %1, %c0_i32_0 : i32
    scf.if %2 {
      %cst_109 = arith.constant 0.000000e+00 : f32
      %534 = vector.broadcast %cst_109 : f32 to vector<2x32xf32>
      %c0_110 = arith.constant 0 : index
      %c0_111 = arith.constant 0 : index
      %535 = vector.load %arg8[%c0_110, %c0_111] : memref<2x32xf32, #tpu.memory_space<vmem>>, vector<2x32xf32>
      tpu.vector_store %arg8[%c0_110, %c0_111], %534 {strides = array<i32>} : memref<2x32xf32, #tpu.memory_space<vmem>>, vector<2x32xf32>,
      %c0_112 = arith.constant 0 : index
      %c0_113 = arith.constant 0 : index
      %536 = vector.load %arg9[%c0_112, %c0_113] : memref<2x32xf32, #tpu.memory_space<vmem>>, vector<2x32xf32>
      tpu.vector_store %arg9[%c0_112, %c0_113], %534 {strides = array<i32>} : memref<2x32xf32, #tpu.memory_space<vmem>>, vector<2x32xf32>,
      %c0_114 = arith.constant 0 : index
      %c0_115 = arith.constant 0 : index
      %537 = vector.load %arg10[%c0_114, %c0_115] : memref<2x32xf32, #tpu.memory_space<vmem>>, vector<2x32xf32>
      tpu.vector_store %arg10[%c0_114, %c0_115], %534 {strides = array<i32>} : memref<2x32xf32, #tpu.memory_space<vmem>>, vector<2x32xf32>,
      %c0_116 = arith.constant 0 : index
      %c0_117 = arith.constant 0 : index
      %538 = vector.load %arg11[%c0_116, %c0_117] : memref<2x32xf32, #tpu.memory_space<vmem>>, vector<2x32xf32>
      tpu.vector_store %arg11[%c0_116, %c0_117], %534 {strides = array<i32>} : memref<2x32xf32, #tpu.memory_space<vmem>>, vector<2x32xf32>,
      %c0_118 = arith.constant 0 : index
      %c0_119 = arith.constant 0 : index
      %539 = vector.load %arg7[%c0_118, %c0_119] : memref<2x32xf32, #tpu.memory_space<vmem>>, vector<2x32xf32>
      tpu.vector_store %arg7[%c0_118, %c0_119], %534 {strides = array<i32>} : memref<2x32xf32, #tpu.memory_space<vmem>>, vector<2x32xf32>,
    } else {
    }
    %c0 = arith.constant 0 : index
    %c0_1 = arith.constant 0 : index
    %3 = vector.load %arg2[%c0, %c0_1] : memref<32x128xf32, #tpu.memory_space<vmem>>, vector<32x128xf32>
    %c0_2 = arith.constant 0 : index
    %c0_3 = arith.constant 0 : index
    %4 = vector.load %arg3[%c0_2, %c0_3] : memref<64x128xf32, #tpu.memory_space<vmem>>, vector<64x128xf32>
    %c0_4 = arith.constant 0 : index
    %c0_5 = arith.constant 0 : index
    %5 = vector.load %arg4[%c0_4, %c0_5] : memref<1x128xf32, #tpu.memory_space<vmem>>, vector<1x128xf32>
    %6 = vector.shape_cast %5 : vector<1x128xf32> to vector<1x128xf32>
    %7 = vector.broadcast %6 : vector<1x128xf32> to vector<2x128xf32>
    %c8_i32 = arith.constant 8 : i32
    %8 = arith.muli %arg0, %c8_i32 : i32
    %c0_6 = arith.constant 0 : index
    %c0_7 = arith.constant 0 : index
    %9 = vector.load %arg8[%c0_6, %c0_7] : memref<2x32xf32, #tpu.memory_space<vmem>>, vector<2x32xf32>
    %c0_8 = arith.constant 0 : index
    %c0_9 = arith.constant 0 : index
    %10 = vector.load %arg9[%c0_8, %c0_9] : memref<2x32xf32, #tpu.memory_space<vmem>>, vector<2x32xf32>
    %c0_10 = arith.constant 0 : index
    %c0_11 = arith.constant 0 : index
    %11 = vector.load %arg10[%c0_10, %c0_11] : memref<2x32xf32, #tpu.memory_space<vmem>>, vector<2x32xf32>
    %c0_12 = arith.constant 0 : index
    %c0_13 = arith.constant 0 : index
    %12 = vector.load %arg11[%c0_12, %c0_13] : memref<2x32xf32, #tpu.memory_space<vmem>>, vector<2x32xf32>
    %c0_14 = arith.constant 0 : index
    %c0_15 = arith.constant 0 : index
    %13 = vector.load %arg7[%c0_14, %c0_15] : memref<2x32xf32, #tpu.memory_space<vmem>>, vector<2x32xf32>
    %c0_i32_16 = arith.constant 0 : i32
    %14 = arith.index_cast %c0_i32_16 : i32 to index
    %c0_17 = arith.constant 0 : index
    %c0_18 = arith.constant 0 : index
    %15 = vector.load %arg1[%14, %c0_17, %c0_18] : memref<8x2x128xf32, #tpu.memory_space<vmem>>, vector<1x2x128xf32>
    %16 = vector.shape_cast %15 : vector<1x2x128xf32> to vector<2x128xf32>
    %cst = arith.constant dense<0.000000e+00> : vector<2x128xf32>
    %17 = tpu.matmul %9, %3, %cst {dimension_numbers = #tpu.dot_dimension_numbers<[1], [0], [0], [1], [0, 0, 1, 1], [], []>} : vector<2x32xf32>, vector<32x128xf32>, vector<2x128xf32> -> vector<2x128xf32>
    %18 = arith.addf %16, %17 : vector<2x128xf32>
    %19 = vector.extract_strided_slice %18 {offsets = [0, 0], sizes = [2, 32], strides = [1, 1]} : vector<2x128xf32> to vector<2x32xf32>
    %20 = arith.negf %19 : vector<2x32xf32>
    %21 = math.exp %20 : vector<2x32xf32>
    %cst_19 = arith.constant 1.000000e+00 : f32
    %22 = vector.broadcast %cst_19 : f32 to vector<2x32xf32>
    %23 = arith.addf %22, %21 : vector<2x32xf32>
    %24 = arith.divf %22, %23 : vector<2x32xf32>
    %25 = vector.extract_strided_slice %18 {offsets = [0, 32], sizes = [2, 32], strides = [1, 1]} : vector<2x128xf32> to vector<2x32xf32>
    %26 = arith.negf %25 : vector<2x32xf32>
    %27 = math.exp %26 : vector<2x32xf32>
    %cst_20 = arith.constant 1.000000e+00 : f32
    %28 = vector.broadcast %cst_20 : f32 to vector<2x32xf32>
    %29 = arith.addf %28, %27 : vector<2x32xf32>
    %30 = arith.divf %28, %29 : vector<2x32xf32>
    %31 = vector.extract_strided_slice %18 {offsets = [0, 64], sizes = [2, 32], strides = [1, 1]} : vector<2x128xf32> to vector<2x32xf32>
    %32 = math.tanh %31 : vector<2x32xf32>
    %33 = vector.extract_strided_slice %18 {offsets = [0, 96], sizes = [2, 32], strides = [1, 1]} : vector<2x128xf32> to vector<2x32xf32>
    %34 = arith.negf %33 : vector<2x32xf32>
    %35 = math.exp %34 : vector<2x32xf32>
    %cst_21 = arith.constant 1.000000e+00 : f32
    %36 = vector.broadcast %cst_21 : f32 to vector<2x32xf32>
    %37 = arith.addf %36, %35 : vector<2x32xf32>
    %38 = arith.divf %36, %37 : vector<2x32xf32>
    %39 = arith.mulf %30, %10 : vector<2x32xf32>
    %40 = arith.mulf %24, %32 : vector<2x32xf32>
    %41 = arith.addf %39, %40 : vector<2x32xf32>
    %42 = math.tanh %41 : vector<2x32xf32>
    %43 = arith.mulf %38, %42 : vector<2x32xf32>
    %44 = tpu.concatenate %43, %11 in 1 : vector<2x32xf32>, vector<2x32xf32> -> vector<2x64xf32>
    %cst_22 = arith.constant dense<0.000000e+00> : vector<2x128xf32>
    %45 = tpu.matmul %44, %4, %cst_22 {dimension_numbers = #tpu.dot_dimension_numbers<[1], [0], [0], [1], [0, 0, 1, 1], [], []>} : vector<2x64xf32>, vector<64x128xf32>, vector<2x128xf32> -> vector<2x128xf32>
    %46 = arith.addf %45, %7 : vector<2x128xf32>
    %47 = vector.extract_strided_slice %46 {offsets = [0, 0], sizes = [2, 32], strides = [1, 1]} : vector<2x128xf32> to vector<2x32xf32>
    %48 = arith.negf %47 : vector<2x32xf32>
    %49 = math.exp %48 : vector<2x32xf32>
    %cst_23 = arith.constant 1.000000e+00 : f32
    %50 = vector.broadcast %cst_23 : f32 to vector<2x32xf32>
    %51 = arith.addf %50, %49 : vector<2x32xf32>
    %52 = arith.divf %50, %51 : vector<2x32xf32>
    %53 = vector.extract_strided_slice %46 {offsets = [0, 32], sizes = [2, 32], strides = [1, 1]} : vector<2x128xf32> to vector<2x32xf32>
    %54 = arith.negf %53 : vector<2x32xf32>
    %55 = math.exp %54 : vector<2x32xf32>
    %cst_24 = arith.constant 1.000000e+00 : f32
    %56 = vector.broadcast %cst_24 : f32 to vector<2x32xf32>
    %57 = arith.addf %56, %55 : vector<2x32xf32>
    %58 = arith.divf %56, %57 : vector<2x32xf32>
    %59 = vector.extract_strided_slice %46 {offsets = [0, 64], sizes = [2, 32], strides = [1, 1]} : vector<2x128xf32> to vector<2x32xf32>
    %60 = math.tanh %59 : vector<2x32xf32>
    %61 = vector.extract_strided_slice %46 {offsets = [0, 96], sizes = [2, 32], strides = [1, 1]} : vector<2x128xf32> to vector<2x32xf32>
    %62 = arith.negf %61 : vector<2x32xf32>
    %63 = math.exp %62 : vector<2x32xf32>
    %cst_25 = arith.constant 1.000000e+00 : f32
    %64 = vector.broadcast %cst_25 : f32 to vector<2x32xf32>
    %65 = arith.addf %64, %63 : vector<2x32xf32>
    %66 = arith.divf %64, %65 : vector<2x32xf32>
    %67 = arith.mulf %58, %12 : vector<2x32xf32>
    %68 = arith.mulf %52, %60 : vector<2x32xf32>
    %69 = arith.addf %67, %68 : vector<2x32xf32>
    %70 = math.tanh %69 : vector<2x32xf32>
    %71 = arith.mulf %66, %70 : vector<2x32xf32>
    %72 = arith.addi %8, %c0_i32_16 : i32
    %73 = arith.index_cast %72 : i32 to index
    %74 = memref.load %arg5[%73] : memref<8xf32, #tpu.memory_space<smem>>
    %75 = vector.broadcast %74 : f32 to vector<2x32xf32>
    %76 = arith.mulf %71, %75 : vector<2x32xf32>
    %77 = arith.addf %13, %76 : vector<2x32xf32>
    %c1_i32 = arith.constant 1 : i32
    %78 = arith.index_cast %c1_i32 : i32 to index
    %c0_26 = arith.constant 0 : index
    %c0_27 = arith.constant 0 : index
    %79 = vector.load %arg1[%78, %c0_26, %c0_27] : memref<8x2x128xf32, #tpu.memory_space<vmem>>, vector<1x2x128xf32>
    %80 = vector.shape_cast %79 : vector<1x2x128xf32> to vector<2x128xf32>
    %cst_28 = arith.constant dense<0.000000e+00> : vector<2x128xf32>
    %81 = tpu.matmul %43, %3, %cst_28 {dimension_numbers = #tpu.dot_dimension_numbers<[1], [0], [0], [1], [0, 0, 1, 1], [], []>} : vector<2x32xf32>, vector<32x128xf32>, vector<2x128xf32> -> vector<2x128xf32>
    %82 = arith.addf %80, %81 : vector<2x128xf32>
    %83 = vector.extract_strided_slice %82 {offsets = [0, 0], sizes = [2, 32], strides = [1, 1]} : vector<2x128xf32> to vector<2x32xf32>
    %84 = arith.negf %83 : vector<2x32xf32>
    %85 = math.exp %84 : vector<2x32xf32>
    %cst_29 = arith.constant 1.000000e+00 : f32
    %86 = vector.broadcast %cst_29 : f32 to vector<2x32xf32>
    %87 = arith.addf %86, %85 : vector<2x32xf32>
    %88 = arith.divf %86, %87 : vector<2x32xf32>
    %89 = vector.extract_strided_slice %82 {offsets = [0, 32], sizes = [2, 32], strides = [1, 1]} : vector<2x128xf32> to vector<2x32xf32>
    %90 = arith.negf %89 : vector<2x32xf32>
    %91 = math.exp %90 : vector<2x32xf32>
    %cst_30 = arith.constant 1.000000e+00 : f32
    %92 = vector.broadcast %cst_30 : f32 to vector<2x32xf32>
    %93 = arith.addf %92, %91 : vector<2x32xf32>
    %94 = arith.divf %92, %93 : vector<2x32xf32>
    %95 = vector.extract_strided_slice %82 {offsets = [0, 64], sizes = [2, 32], strides = [1, 1]} : vector<2x128xf32> to vector<2x32xf32>
    %96 = math.tanh %95 : vector<2x32xf32>
    %97 = vector.extract_strided_slice %82 {offsets = [0, 96], sizes = [2, 32], strides = [1, 1]} : vector<2x128xf32> to vector<2x32xf32>
    %98 = arith.negf %97 : vector<2x32xf32>
    %99 = math.exp %98 : vector<2x32xf32>
    %cst_31 = arith.constant 1.000000e+00 : f32
    %100 = vector.broadcast %cst_31 : f32 to vector<2x32xf32>
    %101 = arith.addf %100, %99 : vector<2x32xf32>
    %102 = arith.divf %100, %101 : vector<2x32xf32>
    %103 = arith.mulf %94, %41 : vector<2x32xf32>
    %104 = arith.mulf %88, %96 : vector<2x32xf32>
    %105 = arith.addf %103, %104 : vector<2x32xf32>
    %106 = math.tanh %105 : vector<2x32xf32>
    %107 = arith.mulf %102, %106 : vector<2x32xf32>
    %108 = tpu.concatenate %107, %71 in 1 : vector<2x32xf32>, vector<2x32xf32> -> vector<2x64xf32>
    %cst_32 = arith.constant dense<0.000000e+00> : vector<2x128xf32>
    %109 = tpu.matmul %108, %4, %cst_32 {dimension_numbers = #tpu.dot_dimension_numbers<[1], [0], [0], [1], [0, 0, 1, 1], [], []>} : vector<2x64xf32>, vector<64x128xf32>, vector<2x128xf32> -> vector<2x128xf32>
    %110 = arith.addf %109, %7 : vector<2x128xf32>
    %111 = vector.extract_strided_slice %110 {offsets = [0, 0], sizes = [2, 32], strides = [1, 1]} : vector<2x128xf32> to vector<2x32xf32>
    %112 = arith.negf %111 : vector<2x32xf32>
    %113 = math.exp %112 : vector<2x32xf32>
    %cst_33 = arith.constant 1.000000e+00 : f32
    %114 = vector.broadcast %cst_33 : f32 to vector<2x32xf32>
    %115 = arith.addf %114, %113 : vector<2x32xf32>
    %116 = arith.divf %114, %115 : vector<2x32xf32>
    %117 = vector.extract_strided_slice %110 {offsets = [0, 32], sizes = [2, 32], strides = [1, 1]} : vector<2x128xf32> to vector<2x32xf32>
    %118 = arith.negf %117 : vector<2x32xf32>
    %119 = math.exp %118 : vector<2x32xf32>
    %cst_34 = arith.constant 1.000000e+00 : f32
    %120 = vector.broadcast %cst_34 : f32 to vector<2x32xf32>
    %121 = arith.addf %120, %119 : vector<2x32xf32>
    %122 = arith.divf %120, %121 : vector<2x32xf32>
    %123 = vector.extract_strided_slice %110 {offsets = [0, 64], sizes = [2, 32], strides = [1, 1]} : vector<2x128xf32> to vector<2x32xf32>
    %124 = math.tanh %123 : vector<2x32xf32>
    %125 = vector.extract_strided_slice %110 {offsets = [0, 96], sizes = [2, 32], strides = [1, 1]} : vector<2x128xf32> to vector<2x32xf32>
    %126 = arith.negf %125 : vector<2x32xf32>
    %127 = math.exp %126 : vector<2x32xf32>
    %cst_35 = arith.constant 1.000000e+00 : f32
    %128 = vector.broadcast %cst_35 : f32 to vector<2x32xf32>
    %129 = arith.addf %128, %127 : vector<2x32xf32>
    %130 = arith.divf %128, %129 : vector<2x32xf32>
    %131 = arith.mulf %122, %69 : vector<2x32xf32>
    %132 = arith.mulf %116, %124 : vector<2x32xf32>
    %133 = arith.addf %131, %132 : vector<2x32xf32>
    %134 = math.tanh %133 : vector<2x32xf32>
    %135 = arith.mulf %130, %134 : vector<2x32xf32>
    %136 = arith.addi %8, %c1_i32 : i32
    %137 = arith.index_cast %136 : i32 to index
    %138 = memref.load %arg5[%137] : memref<8xf32, #tpu.memory_space<smem>>
    %139 = vector.broadcast %138 : f32 to vector<2x32xf32>
    %140 = arith.mulf %135, %139 : vector<2x32xf32>
    %141 = arith.addf %77, %140 : vector<2x32xf32>
    %c2_i32 = arith.constant 2 : i32
    %142 = arith.index_cast %c2_i32 : i32 to index
    %c0_36 = arith.constant 0 : index
    %c0_37 = arith.constant 0 : index
    %143 = vector.load %arg1[%142, %c0_36, %c0_37] : memref<8x2x128xf32, #tpu.memory_space<vmem>>, vector<1x2x128xf32>
    %144 = vector.shape_cast %143 : vector<1x2x128xf32> to vector<2x128xf32>
    %cst_38 = arith.constant dense<0.000000e+00> : vector<2x128xf32>
    %145 = tpu.matmul %107, %3, %cst_38 {dimension_numbers = #tpu.dot_dimension_numbers<[1], [0], [0], [1], [0, 0, 1, 1], [], []>} : vector<2x32xf32>, vector<32x128xf32>, vector<2x128xf32> -> vector<2x128xf32>
    %146 = arith.addf %144, %145 : vector<2x128xf32>
    %147 = vector.extract_strided_slice %146 {offsets = [0, 0], sizes = [2, 32], strides = [1, 1]} : vector<2x128xf32> to vector<2x32xf32>
    %148 = arith.negf %147 : vector<2x32xf32>
    %149 = math.exp %148 : vector<2x32xf32>
    %cst_39 = arith.constant 1.000000e+00 : f32
    %150 = vector.broadcast %cst_39 : f32 to vector<2x32xf32>
    %151 = arith.addf %150, %149 : vector<2x32xf32>
    %152 = arith.divf %150, %151 : vector<2x32xf32>
    %153 = vector.extract_strided_slice %146 {offsets = [0, 32], sizes = [2, 32], strides = [1, 1]} : vector<2x128xf32> to vector<2x32xf32>
    %154 = arith.negf %153 : vector<2x32xf32>
    %155 = math.exp %154 : vector<2x32xf32>
    %cst_40 = arith.constant 1.000000e+00 : f32
    %156 = vector.broadcast %cst_40 : f32 to vector<2x32xf32>
    %157 = arith.addf %156, %155 : vector<2x32xf32>
    %158 = arith.divf %156, %157 : vector<2x32xf32>
    %159 = vector.extract_strided_slice %146 {offsets = [0, 64], sizes = [2, 32], strides = [1, 1]} : vector<2x128xf32> to vector<2x32xf32>
    %160 = math.tanh %159 : vector<2x32xf32>
    %161 = vector.extract_strided_slice %146 {offsets = [0, 96], sizes = [2, 32], strides = [1, 1]} : vector<2x128xf32> to vector<2x32xf32>
    %162 = arith.negf %161 : vector<2x32xf32>
    %163 = math.exp %162 : vector<2x32xf32>
    %cst_41 = arith.constant 1.000000e+00 : f32
    %164 = vector.broadcast %cst_41 : f32 to vector<2x32xf32>
    %165 = arith.addf %164, %163 : vector<2x32xf32>
    %166 = arith.divf %164, %165 : vector<2x32xf32>
    %167 = arith.mulf %158, %105 : vector<2x32xf32>
    %168 = arith.mulf %152, %160 : vector<2x32xf32>
    %169 = arith.addf %167, %168 : vector<2x32xf32>
    %170 = math.tanh %169 : vector<2x32xf32>
    %171 = arith.mulf %166, %170 : vector<2x32xf32>
    %172 = tpu.concatenate %171, %135 in 1 : vector<2x32xf32>, vector<2x32xf32> -> vector<2x64xf32>
    %cst_42 = arith.constant dense<0.000000e+00> : vector<2x128xf32>
    %173 = tpu.matmul %172, %4, %cst_42 {dimension_numbers = #tpu.dot_dimension_numbers<[1], [0], [0], [1], [0, 0, 1, 1], [], []>} : vector<2x64xf32>, vector<64x128xf32>, vector<2x128xf32> -> vector<2x128xf32>
    %174 = arith.addf %173, %7 : vector<2x128xf32>
    %175 = vector.extract_strided_slice %174 {offsets = [0, 0], sizes = [2, 32], strides = [1, 1]} : vector<2x128xf32> to vector<2x32xf32>
    %176 = arith.negf %175 : vector<2x32xf32>
    %177 = math.exp %176 : vector<2x32xf32>
    %cst_43 = arith.constant 1.000000e+00 : f32
    %178 = vector.broadcast %cst_43 : f32 to vector<2x32xf32>
    %179 = arith.addf %178, %177 : vector<2x32xf32>
    %180 = arith.divf %178, %179 : vector<2x32xf32>
    %181 = vector.extract_strided_slice %174 {offsets = [0, 32], sizes = [2, 32], strides = [1, 1]} : vector<2x128xf32> to vector<2x32xf32>
    %182 = arith.negf %181 : vector<2x32xf32>
    %183 = math.exp %182 : vector<2x32xf32>
    %cst_44 = arith.constant 1.000000e+00 : f32
    %184 = vector.broadcast %cst_44 : f32 to vector<2x32xf32>
    %185 = arith.addf %184, %183 : vector<2x32xf32>
    %186 = arith.divf %184, %185 : vector<2x32xf32>
    %187 = vector.extract_strided_slice %174 {offsets = [0, 64], sizes = [2, 32], strides = [1, 1]} : vector<2x128xf32> to vector<2x32xf32>
    %188 = math.tanh %187 : vector<2x32xf32>
    %189 = vector.extract_strided_slice %174 {offsets = [0, 96], sizes = [2, 32], strides = [1, 1]} : vector<2x128xf32> to vector<2x32xf32>
    %190 = arith.negf %189 : vector<2x32xf32>
    %191 = math.exp %190 : vector<2x32xf32>
    %cst_45 = arith.constant 1.000000e+00 : f32
    %192 = vector.broadcast %cst_45 : f32 to vector<2x32xf32>
    %193 = arith.addf %192, %191 : vector<2x32xf32>
    %194 = arith.divf %192, %193 : vector<2x32xf32>
    %195 = arith.mulf %186, %133 : vector<2x32xf32>
    %196 = arith.mulf %180, %188 : vector<2x32xf32>
    %197 = arith.addf %195, %196 : vector<2x32xf32>
    %198 = math.tanh %197 : vector<2x32xf32>
    %199 = arith.mulf %194, %198 : vector<2x32xf32>
    %200 = arith.addi %8, %c2_i32 : i32
    %201 = arith.index_cast %200 : i32 to index
    %202 = memref.load %arg5[%201] : memref<8xf32, #tpu.memory_space<smem>>
    %203 = vector.broadcast %202 : f32 to vector<2x32xf32>
    %204 = arith.mulf %199, %203 : vector<2x32xf32>
    %205 = arith.addf %141, %204 : vector<2x32xf32>
    %c3_i32 = arith.constant 3 : i32
    %206 = arith.index_cast %c3_i32 : i32 to index
    %c0_46 = arith.constant 0 : index
    %c0_47 = arith.constant 0 : index
    %207 = vector.load %arg1[%206, %c0_46, %c0_47] : memref<8x2x128xf32, #tpu.memory_space<vmem>>, vector<1x2x128xf32>
    %208 = vector.shape_cast %207 : vector<1x2x128xf32> to vector<2x128xf32>
    %cst_48 = arith.constant dense<0.000000e+00> : vector<2x128xf32>
    %209 = tpu.matmul %171, %3, %cst_48 {dimension_numbers = #tpu.dot_dimension_numbers<[1], [0], [0], [1], [0, 0, 1, 1], [], []>} : vector<2x32xf32>, vector<32x128xf32>, vector<2x128xf32> -> vector<2x128xf32>
    %210 = arith.addf %208, %209 : vector<2x128xf32>
    %211 = vector.extract_strided_slice %210 {offsets = [0, 0], sizes = [2, 32], strides = [1, 1]} : vector<2x128xf32> to vector<2x32xf32>
    %212 = arith.negf %211 : vector<2x32xf32>
    %213 = math.exp %212 : vector<2x32xf32>
    %cst_49 = arith.constant 1.000000e+00 : f32
    %214 = vector.broadcast %cst_49 : f32 to vector<2x32xf32>
    %215 = arith.addf %214, %213 : vector<2x32xf32>
    %216 = arith.divf %214, %215 : vector<2x32xf32>
    %217 = vector.extract_strided_slice %210 {offsets = [0, 32], sizes = [2, 32], strides = [1, 1]} : vector<2x128xf32> to vector<2x32xf32>
    %218 = arith.negf %217 : vector<2x32xf32>
    %219 = math.exp %218 : vector<2x32xf32>
    %cst_50 = arith.constant 1.000000e+00 : f32
    %220 = vector.broadcast %cst_50 : f32 to vector<2x32xf32>
    %221 = arith.addf %220, %219 : vector<2x32xf32>
    %222 = arith.divf %220, %221 : vector<2x32xf32>
    %223 = vector.extract_strided_slice %210 {offsets = [0, 64], sizes = [2, 32], strides = [1, 1]} : vector<2x128xf32> to vector<2x32xf32>
    %224 = math.tanh %223 : vector<2x32xf32>
    %225 = vector.extract_strided_slice %210 {offsets = [0, 96], sizes = [2, 32], strides = [1, 1]} : vector<2x128xf32> to vector<2x32xf32>
    %226 = arith.negf %225 : vector<2x32xf32>
    %227 = math.exp %226 : vector<2x32xf32>
    %cst_51 = arith.constant 1.000000e+00 : f32
    %228 = vector.broadcast %cst_51 : f32 to vector<2x32xf32>
    %229 = arith.addf %228, %227 : vector<2x32xf32>
    %230 = arith.divf %228, %229 : vector<2x32xf32>
    %231 = arith.mulf %222, %169 : vector<2x32xf32>
    %232 = arith.mulf %216, %224 : vector<2x32xf32>
    %233 = arith.addf %231, %232 : vector<2x32xf32>
    %234 = math.tanh %233 : vector<2x32xf32>
    %235 = arith.mulf %230, %234 : vector<2x32xf32>
    %236 = tpu.concatenate %235, %199 in 1 : vector<2x32xf32>, vector<2x32xf32> -> vector<2x64xf32>
    %cst_52 = arith.constant dense<0.000000e+00> : vector<2x128xf32>
    %237 = tpu.matmul %236, %4, %cst_52 {dimension_numbers = #tpu.dot_dimension_numbers<[1], [0], [0], [1], [0, 0, 1, 1], [], []>} : vector<2x64xf32>, vector<64x128xf32>, vector<2x128xf32> -> vector<2x128xf32>
    %238 = arith.addf %237, %7 : vector<2x128xf32>
    %239 = vector.extract_strided_slice %238 {offsets = [0, 0], sizes = [2, 32], strides = [1, 1]} : vector<2x128xf32> to vector<2x32xf32>
    %240 = arith.negf %239 : vector<2x32xf32>
    %241 = math.exp %240 : vector<2x32xf32>
    %cst_53 = arith.constant 1.000000e+00 : f32
    %242 = vector.broadcast %cst_53 : f32 to vector<2x32xf32>
    %243 = arith.addf %242, %241 : vector<2x32xf32>
    %244 = arith.divf %242, %243 : vector<2x32xf32>
    %245 = vector.extract_strided_slice %238 {offsets = [0, 32], sizes = [2, 32], strides = [1, 1]} : vector<2x128xf32> to vector<2x32xf32>
    %246 = arith.negf %245 : vector<2x32xf32>
    %247 = math.exp %246 : vector<2x32xf32>
    %cst_54 = arith.constant 1.000000e+00 : f32
    %248 = vector.broadcast %cst_54 : f32 to vector<2x32xf32>
    %249 = arith.addf %248, %247 : vector<2x32xf32>
    %250 = arith.divf %248, %249 : vector<2x32xf32>
    %251 = vector.extract_strided_slice %238 {offsets = [0, 64], sizes = [2, 32], strides = [1, 1]} : vector<2x128xf32> to vector<2x32xf32>
    %252 = math.tanh %251 : vector<2x32xf32>
    %253 = vector.extract_strided_slice %238 {offsets = [0, 96], sizes = [2, 32], strides = [1, 1]} : vector<2x128xf32> to vector<2x32xf32>
    %254 = arith.negf %253 : vector<2x32xf32>
    %255 = math.exp %254 : vector<2x32xf32>
    %cst_55 = arith.constant 1.000000e+00 : f32
    %256 = vector.broadcast %cst_55 : f32 to vector<2x32xf32>
    %257 = arith.addf %256, %255 : vector<2x32xf32>
    %258 = arith.divf %256, %257 : vector<2x32xf32>
    %259 = arith.mulf %250, %197 : vector<2x32xf32>
    %260 = arith.mulf %244, %252 : vector<2x32xf32>
    %261 = arith.addf %259, %260 : vector<2x32xf32>
    %262 = math.tanh %261 : vector<2x32xf32>
    %263 = arith.mulf %258, %262 : vector<2x32xf32>
    %264 = arith.addi %8, %c3_i32 : i32
    %265 = arith.index_cast %264 : i32 to index
    %266 = memref.load %arg5[%265] : memref<8xf32, #tpu.memory_space<smem>>
    %267 = vector.broadcast %266 : f32 to vector<2x32xf32>
    %268 = arith.mulf %263, %267 : vector<2x32xf32>
    %269 = arith.addf %205, %268 : vector<2x32xf32>
    %c4_i32 = arith.constant 4 : i32
    %270 = arith.index_cast %c4_i32 : i32 to index
    %c0_56 = arith.constant 0 : index
    %c0_57 = arith.constant 0 : index
    %271 = vector.load %arg1[%270, %c0_56, %c0_57] : memref<8x2x128xf32, #tpu.memory_space<vmem>>, vector<1x2x128xf32>
    %272 = vector.shape_cast %271 : vector<1x2x128xf32> to vector<2x128xf32>
    %cst_58 = arith.constant dense<0.000000e+00> : vector<2x128xf32>
    %273 = tpu.matmul %235, %3, %cst_58 {dimension_numbers = #tpu.dot_dimension_numbers<[1], [0], [0], [1], [0, 0, 1, 1], [], []>} : vector<2x32xf32>, vector<32x128xf32>, vector<2x128xf32> -> vector<2x128xf32>
    %274 = arith.addf %272, %273 : vector<2x128xf32>
    %275 = vector.extract_strided_slice %274 {offsets = [0, 0], sizes = [2, 32], strides = [1, 1]} : vector<2x128xf32> to vector<2x32xf32>
    %276 = arith.negf %275 : vector<2x32xf32>
    %277 = math.exp %276 : vector<2x32xf32>
    %cst_59 = arith.constant 1.000000e+00 : f32
    %278 = vector.broadcast %cst_59 : f32 to vector<2x32xf32>
    %279 = arith.addf %278, %277 : vector<2x32xf32>
    %280 = arith.divf %278, %279 : vector<2x32xf32>
    %281 = vector.extract_strided_slice %274 {offsets = [0, 32], sizes = [2, 32], strides = [1, 1]} : vector<2x128xf32> to vector<2x32xf32>
    %282 = arith.negf %281 : vector<2x32xf32>
    %283 = math.exp %282 : vector<2x32xf32>
    %cst_60 = arith.constant 1.000000e+00 : f32
    %284 = vector.broadcast %cst_60 : f32 to vector<2x32xf32>
    %285 = arith.addf %284, %283 : vector<2x32xf32>
    %286 = arith.divf %284, %285 : vector<2x32xf32>
    %287 = vector.extract_strided_slice %274 {offsets = [0, 64], sizes = [2, 32], strides = [1, 1]} : vector<2x128xf32> to vector<2x32xf32>
    %288 = math.tanh %287 : vector<2x32xf32>
    %289 = vector.extract_strided_slice %274 {offsets = [0, 96], sizes = [2, 32], strides = [1, 1]} : vector<2x128xf32> to vector<2x32xf32>
    %290 = arith.negf %289 : vector<2x32xf32>
    %291 = math.exp %290 : vector<2x32xf32>
    %cst_61 = arith.constant 1.000000e+00 : f32
    %292 = vector.broadcast %cst_61 : f32 to vector<2x32xf32>
    %293 = arith.addf %292, %291 : vector<2x32xf32>
    %294 = arith.divf %292, %293 : vector<2x32xf32>
    %295 = arith.mulf %286, %233 : vector<2x32xf32>
    %296 = arith.mulf %280, %288 : vector<2x32xf32>
    %297 = arith.addf %295, %296 : vector<2x32xf32>
    %298 = math.tanh %297 : vector<2x32xf32>
    %299 = arith.mulf %294, %298 : vector<2x32xf32>
    %300 = tpu.concatenate %299, %263 in 1 : vector<2x32xf32>, vector<2x32xf32> -> vector<2x64xf32>
    %cst_62 = arith.constant dense<0.000000e+00> : vector<2x128xf32>
    %301 = tpu.matmul %300, %4, %cst_62 {dimension_numbers = #tpu.dot_dimension_numbers<[1], [0], [0], [1], [0, 0, 1, 1], [], []>} : vector<2x64xf32>, vector<64x128xf32>, vector<2x128xf32> -> vector<2x128xf32>
    %302 = arith.addf %301, %7 : vector<2x128xf32>
    %303 = vector.extract_strided_slice %302 {offsets = [0, 0], sizes = [2, 32], strides = [1, 1]} : vector<2x128xf32> to vector<2x32xf32>
    %304 = arith.negf %303 : vector<2x32xf32>
    %305 = math.exp %304 : vector<2x32xf32>
    %cst_63 = arith.constant 1.000000e+00 : f32
    %306 = vector.broadcast %cst_63 : f32 to vector<2x32xf32>
    %307 = arith.addf %306, %305 : vector<2x32xf32>
    %308 = arith.divf %306, %307 : vector<2x32xf32>
    %309 = vector.extract_strided_slice %302 {offsets = [0, 32], sizes = [2, 32], strides = [1, 1]} : vector<2x128xf32> to vector<2x32xf32>
    %310 = arith.negf %309 : vector<2x32xf32>
    %311 = math.exp %310 : vector<2x32xf32>
    %cst_64 = arith.constant 1.000000e+00 : f32
    %312 = vector.broadcast %cst_64 : f32 to vector<2x32xf32>
    %313 = arith.addf %312, %311 : vector<2x32xf32>
    %314 = arith.divf %312, %313 : vector<2x32xf32>
    %315 = vector.extract_strided_slice %302 {offsets = [0, 64], sizes = [2, 32], strides = [1, 1]} : vector<2x128xf32> to vector<2x32xf32>
    %316 = math.tanh %315 : vector<2x32xf32>
    %317 = vector.extract_strided_slice %302 {offsets = [0, 96], sizes = [2, 32], strides = [1, 1]} : vector<2x128xf32> to vector<2x32xf32>
    %318 = arith.negf %317 : vector<2x32xf32>
    %319 = math.exp %318 : vector<2x32xf32>
    %cst_65 = arith.constant 1.000000e+00 : f32
    %320 = vector.broadcast %cst_65 : f32 to vector<2x32xf32>
    %321 = arith.addf %320, %319 : vector<2x32xf32>
    %322 = arith.divf %320, %321 : vector<2x32xf32>
    %323 = arith.mulf %314, %261 : vector<2x32xf32>
    %324 = arith.mulf %308, %316 : vector<2x32xf32>
    %325 = arith.addf %323, %324 : vector<2x32xf32>
    %326 = math.tanh %325 : vector<2x32xf32>
    %327 = arith.mulf %322, %326 : vector<2x32xf32>
    %328 = arith.addi %8, %c4_i32 : i32
    %329 = arith.index_cast %328 : i32 to index
    %330 = memref.load %arg5[%329] : memref<8xf32, #tpu.memory_space<smem>>
    %331 = vector.broadcast %330 : f32 to vector<2x32xf32>
    %332 = arith.mulf %327, %331 : vector<2x32xf32>
    %333 = arith.addf %269, %332 : vector<2x32xf32>
    %c5_i32 = arith.constant 5 : i32
    %334 = arith.index_cast %c5_i32 : i32 to index
    %c0_66 = arith.constant 0 : index
    %c0_67 = arith.constant 0 : index
    %335 = vector.load %arg1[%334, %c0_66, %c0_67] : memref<8x2x128xf32, #tpu.memory_space<vmem>>, vector<1x2x128xf32>
    %336 = vector.shape_cast %335 : vector<1x2x128xf32> to vector<2x128xf32>
    %cst_68 = arith.constant dense<0.000000e+00> : vector<2x128xf32>
    %337 = tpu.matmul %299, %3, %cst_68 {dimension_numbers = #tpu.dot_dimension_numbers<[1], [0], [0], [1], [0, 0, 1, 1], [], []>} : vector<2x32xf32>, vector<32x128xf32>, vector<2x128xf32> -> vector<2x128xf32>
    %338 = arith.addf %336, %337 : vector<2x128xf32>
    %339 = vector.extract_strided_slice %338 {offsets = [0, 0], sizes = [2, 32], strides = [1, 1]} : vector<2x128xf32> to vector<2x32xf32>
    %340 = arith.negf %339 : vector<2x32xf32>
    %341 = math.exp %340 : vector<2x32xf32>
    %cst_69 = arith.constant 1.000000e+00 : f32
    %342 = vector.broadcast %cst_69 : f32 to vector<2x32xf32>
    %343 = arith.addf %342, %341 : vector<2x32xf32>
    %344 = arith.divf %342, %343 : vector<2x32xf32>
    %345 = vector.extract_strided_slice %338 {offsets = [0, 32], sizes = [2, 32], strides = [1, 1]} : vector<2x128xf32> to vector<2x32xf32>
    %346 = arith.negf %345 : vector<2x32xf32>
    %347 = math.exp %346 : vector<2x32xf32>
    %cst_70 = arith.constant 1.000000e+00 : f32
    %348 = vector.broadcast %cst_70 : f32 to vector<2x32xf32>
    %349 = arith.addf %348, %347 : vector<2x32xf32>
    %350 = arith.divf %348, %349 : vector<2x32xf32>
    %351 = vector.extract_strided_slice %338 {offsets = [0, 64], sizes = [2, 32], strides = [1, 1]} : vector<2x128xf32> to vector<2x32xf32>
    %352 = math.tanh %351 : vector<2x32xf32>
    %353 = vector.extract_strided_slice %338 {offsets = [0, 96], sizes = [2, 32], strides = [1, 1]} : vector<2x128xf32> to vector<2x32xf32>
    %354 = arith.negf %353 : vector<2x32xf32>
    %355 = math.exp %354 : vector<2x32xf32>
    %cst_71 = arith.constant 1.000000e+00 : f32
    %356 = vector.broadcast %cst_71 : f32 to vector<2x32xf32>
    %357 = arith.addf %356, %355 : vector<2x32xf32>
    %358 = arith.divf %356, %357 : vector<2x32xf32>
    %359 = arith.mulf %350, %297 : vector<2x32xf32>
    %360 = arith.mulf %344, %352 : vector<2x32xf32>
    %361 = arith.addf %359, %360 : vector<2x32xf32>
    %362 = math.tanh %361 : vector<2x32xf32>
    %363 = arith.mulf %358, %362 : vector<2x32xf32>
    %364 = tpu.concatenate %363, %327 in 1 : vector<2x32xf32>, vector<2x32xf32> -> vector<2x64xf32>
    %cst_72 = arith.constant dense<0.000000e+00> : vector<2x128xf32>
    %365 = tpu.matmul %364, %4, %cst_72 {dimension_numbers = #tpu.dot_dimension_numbers<[1], [0], [0], [1], [0, 0, 1, 1], [], []>} : vector<2x64xf32>, vector<64x128xf32>, vector<2x128xf32> -> vector<2x128xf32>
    %366 = arith.addf %365, %7 : vector<2x128xf32>
    %367 = vector.extract_strided_slice %366 {offsets = [0, 0], sizes = [2, 32], strides = [1, 1]} : vector<2x128xf32> to vector<2x32xf32>
    %368 = arith.negf %367 : vector<2x32xf32>
    %369 = math.exp %368 : vector<2x32xf32>
    %cst_73 = arith.constant 1.000000e+00 : f32
    %370 = vector.broadcast %cst_73 : f32 to vector<2x32xf32>
    %371 = arith.addf %370, %369 : vector<2x32xf32>
    %372 = arith.divf %370, %371 : vector<2x32xf32>
    %373 = vector.extract_strided_slice %366 {offsets = [0, 32], sizes = [2, 32], strides = [1, 1]} : vector<2x128xf32> to vector<2x32xf32>
    %374 = arith.negf %373 : vector<2x32xf32>
    %375 = math.exp %374 : vector<2x32xf32>
    %cst_74 = arith.constant 1.000000e+00 : f32
    %376 = vector.broadcast %cst_74 : f32 to vector<2x32xf32>
    %377 = arith.addf %376, %375 : vector<2x32xf32>
    %378 = arith.divf %376, %377 : vector<2x32xf32>
    %379 = vector.extract_strided_slice %366 {offsets = [0, 64], sizes = [2, 32], strides = [1, 1]} : vector<2x128xf32> to vector<2x32xf32>
    %380 = math.tanh %379 : vector<2x32xf32>
    %381 = vector.extract_strided_slice %366 {offsets = [0, 96], sizes = [2, 32], strides = [1, 1]} : vector<2x128xf32> to vector<2x32xf32>
    %382 = arith.negf %381 : vector<2x32xf32>
    %383 = math.exp %382 : vector<2x32xf32>
    %cst_75 = arith.constant 1.000000e+00 : f32
    %384 = vector.broadcast %cst_75 : f32 to vector<2x32xf32>
    %385 = arith.addf %384, %383 : vector<2x32xf32>
    %386 = arith.divf %384, %385 : vector<2x32xf32>
    %387 = arith.mulf %378, %325 : vector<2x32xf32>
    %388 = arith.mulf %372, %380 : vector<2x32xf32>
    %389 = arith.addf %387, %388 : vector<2x32xf32>
    %390 = math.tanh %389 : vector<2x32xf32>
    %391 = arith.mulf %386, %390 : vector<2x32xf32>
    %392 = arith.addi %8, %c5_i32 : i32
    %393 = arith.index_cast %392 : i32 to index
    %394 = memref.load %arg5[%393] : memref<8xf32, #tpu.memory_space<smem>>
    %395 = vector.broadcast %394 : f32 to vector<2x32xf32>
    %396 = arith.mulf %391, %395 : vector<2x32xf32>
    %397 = arith.addf %333, %396 : vector<2x32xf32>
    %c6_i32 = arith.constant 6 : i32
    %398 = arith.index_cast %c6_i32 : i32 to index
    %c0_76 = arith.constant 0 : index
    %c0_77 = arith.constant 0 : index
    %399 = vector.load %arg1[%398, %c0_76, %c0_77] : memref<8x2x128xf32, #tpu.memory_space<vmem>>, vector<1x2x128xf32>
    %400 = vector.shape_cast %399 : vector<1x2x128xf32> to vector<2x128xf32>
    %cst_78 = arith.constant dense<0.000000e+00> : vector<2x128xf32>
    %401 = tpu.matmul %363, %3, %cst_78 {dimension_numbers = #tpu.dot_dimension_numbers<[1], [0], [0], [1], [0, 0, 1, 1], [], []>} : vector<2x32xf32>, vector<32x128xf32>, vector<2x128xf32> -> vector<2x128xf32>
    %402 = arith.addf %400, %401 : vector<2x128xf32>
    %403 = vector.extract_strided_slice %402 {offsets = [0, 0], sizes = [2, 32], strides = [1, 1]} : vector<2x128xf32> to vector<2x32xf32>
    %404 = arith.negf %403 : vector<2x32xf32>
    %405 = math.exp %404 : vector<2x32xf32>
    %cst_79 = arith.constant 1.000000e+00 : f32
    %406 = vector.broadcast %cst_79 : f32 to vector<2x32xf32>
    %407 = arith.addf %406, %405 : vector<2x32xf32>
    %408 = arith.divf %406, %407 : vector<2x32xf32>
    %409 = vector.extract_strided_slice %402 {offsets = [0, 32], sizes = [2, 32], strides = [1, 1]} : vector<2x128xf32> to vector<2x32xf32>
    %410 = arith.negf %409 : vector<2x32xf32>
    %411 = math.exp %410 : vector<2x32xf32>
    %cst_80 = arith.constant 1.000000e+00 : f32
    %412 = vector.broadcast %cst_80 : f32 to vector<2x32xf32>
    %413 = arith.addf %412, %411 : vector<2x32xf32>
    %414 = arith.divf %412, %413 : vector<2x32xf32>
    %415 = vector.extract_strided_slice %402 {offsets = [0, 64], sizes = [2, 32], strides = [1, 1]} : vector<2x128xf32> to vector<2x32xf32>
    %416 = math.tanh %415 : vector<2x32xf32>
    %417 = vector.extract_strided_slice %402 {offsets = [0, 96], sizes = [2, 32], strides = [1, 1]} : vector<2x128xf32> to vector<2x32xf32>
    %418 = arith.negf %417 : vector<2x32xf32>
    %419 = math.exp %418 : vector<2x32xf32>
    %cst_81 = arith.constant 1.000000e+00 : f32
    %420 = vector.broadcast %cst_81 : f32 to vector<2x32xf32>
    %421 = arith.addf %420, %419 : vector<2x32xf32>
    %422 = arith.divf %420, %421 : vector<2x32xf32>
    %423 = arith.mulf %414, %361 : vector<2x32xf32>
    %424 = arith.mulf %408, %416 : vector<2x32xf32>
    %425 = arith.addf %423, %424 : vector<2x32xf32>
    %426 = math.tanh %425 : vector<2x32xf32>
    %427 = arith.mulf %422, %426 : vector<2x32xf32>
    %428 = tpu.concatenate %427, %391 in 1 : vector<2x32xf32>, vector<2x32xf32> -> vector<2x64xf32>
    %cst_82 = arith.constant dense<0.000000e+00> : vector<2x128xf32>
    %429 = tpu.matmul %428, %4, %cst_82 {dimension_numbers = #tpu.dot_dimension_numbers<[1], [0], [0], [1], [0, 0, 1, 1], [], []>} : vector<2x64xf32>, vector<64x128xf32>, vector<2x128xf32> -> vector<2x128xf32>
    %430 = arith.addf %429, %7 : vector<2x128xf32>
    %431 = vector.extract_strided_slice %430 {offsets = [0, 0], sizes = [2, 32], strides = [1, 1]} : vector<2x128xf32> to vector<2x32xf32>
    %432 = arith.negf %431 : vector<2x32xf32>
    %433 = math.exp %432 : vector<2x32xf32>
    %cst_83 = arith.constant 1.000000e+00 : f32
    %434 = vector.broadcast %cst_83 : f32 to vector<2x32xf32>
    %435 = arith.addf %434, %433 : vector<2x32xf32>
    %436 = arith.divf %434, %435 : vector<2x32xf32>
    %437 = vector.extract_strided_slice %430 {offsets = [0, 32], sizes = [2, 32], strides = [1, 1]} : vector<2x128xf32> to vector<2x32xf32>
    %438 = arith.negf %437 : vector<2x32xf32>
    %439 = math.exp %438 : vector<2x32xf32>
    %cst_84 = arith.constant 1.000000e+00 : f32
    %440 = vector.broadcast %cst_84 : f32 to vector<2x32xf32>
    %441 = arith.addf %440, %439 : vector<2x32xf32>
    %442 = arith.divf %440, %441 : vector<2x32xf32>
    %443 = vector.extract_strided_slice %430 {offsets = [0, 64], sizes = [2, 32], strides = [1, 1]} : vector<2x128xf32> to vector<2x32xf32>
    %444 = math.tanh %443 : vector<2x32xf32>
    %445 = vector.extract_strided_slice %430 {offsets = [0, 96], sizes = [2, 32], strides = [1, 1]} : vector<2x128xf32> to vector<2x32xf32>
    %446 = arith.negf %445 : vector<2x32xf32>
    %447 = math.exp %446 : vector<2x32xf32>
    %cst_85 = arith.constant 1.000000e+00 : f32
    %448 = vector.broadcast %cst_85 : f32 to vector<2x32xf32>
    %449 = arith.addf %448, %447 : vector<2x32xf32>
    %450 = arith.divf %448, %449 : vector<2x32xf32>
    %451 = arith.mulf %442, %389 : vector<2x32xf32>
    %452 = arith.mulf %436, %444 : vector<2x32xf32>
    %453 = arith.addf %451, %452 : vector<2x32xf32>
    %454 = math.tanh %453 : vector<2x32xf32>
    %455 = arith.mulf %450, %454 : vector<2x32xf32>
    %456 = arith.addi %8, %c6_i32 : i32
    %457 = arith.index_cast %456 : i32 to index
    %458 = memref.load %arg5[%457] : memref<8xf32, #tpu.memory_space<smem>>
    %459 = vector.broadcast %458 : f32 to vector<2x32xf32>
    %460 = arith.mulf %455, %459 : vector<2x32xf32>
    %461 = arith.addf %397, %460 : vector<2x32xf32>
    %c7_i32 = arith.constant 7 : i32
    %462 = arith.index_cast %c7_i32 : i32 to index
    %c0_86 = arith.constant 0 : index
    %c0_87 = arith.constant 0 : index
    %463 = vector.load %arg1[%462, %c0_86, %c0_87] : memref<8x2x128xf32, #tpu.memory_space<vmem>>, vector<1x2x128xf32>
    %464 = vector.shape_cast %463 : vector<1x2x128xf32> to vector<2x128xf32>
    %cst_88 = arith.constant dense<0.000000e+00> : vector<2x128xf32>
    %465 = tpu.matmul %427, %3, %cst_88 {dimension_numbers = #tpu.dot_dimension_numbers<[1], [0], [0], [1], [0, 0, 1, 1], [], []>} : vector<2x32xf32>, vector<32x128xf32>, vector<2x128xf32> -> vector<2x128xf32>
    %466 = arith.addf %464, %465 : vector<2x128xf32>
    %467 = vector.extract_strided_slice %466 {offsets = [0, 0], sizes = [2, 32], strides = [1, 1]} : vector<2x128xf32> to vector<2x32xf32>
    %468 = arith.negf %467 : vector<2x32xf32>
    %469 = math.exp %468 : vector<2x32xf32>
    %cst_89 = arith.constant 1.000000e+00 : f32
    %470 = vector.broadcast %cst_89 : f32 to vector<2x32xf32>
    %471 = arith.addf %470, %469 : vector<2x32xf32>
    %472 = arith.divf %470, %471 : vector<2x32xf32>
    %473 = vector.extract_strided_slice %466 {offsets = [0, 32], sizes = [2, 32], strides = [1, 1]} : vector<2x128xf32> to vector<2x32xf32>
    %474 = arith.negf %473 : vector<2x32xf32>
    %475 = math.exp %474 : vector<2x32xf32>
    %cst_90 = arith.constant 1.000000e+00 : f32
    %476 = vector.broadcast %cst_90 : f32 to vector<2x32xf32>
    %477 = arith.addf %476, %475 : vector<2x32xf32>
    %478 = arith.divf %476, %477 : vector<2x32xf32>
    %479 = vector.extract_strided_slice %466 {offsets = [0, 64], sizes = [2, 32], strides = [1, 1]} : vector<2x128xf32> to vector<2x32xf32>
    %480 = math.tanh %479 : vector<2x32xf32>
    %481 = vector.extract_strided_slice %466 {offsets = [0, 96], sizes = [2, 32], strides = [1, 1]} : vector<2x128xf32> to vector<2x32xf32>
    %482 = arith.negf %481 : vector<2x32xf32>
    %483 = math.exp %482 : vector<2x32xf32>
    %cst_91 = arith.constant 1.000000e+00 : f32
    %484 = vector.broadcast %cst_91 : f32 to vector<2x32xf32>
    %485 = arith.addf %484, %483 : vector<2x32xf32>
    %486 = arith.divf %484, %485 : vector<2x32xf32>
    %487 = arith.mulf %478, %425 : vector<2x32xf32>
    %488 = arith.mulf %472, %480 : vector<2x32xf32>
    %489 = arith.addf %487, %488 : vector<2x32xf32>
    %490 = math.tanh %489 : vector<2x32xf32>
    %491 = arith.mulf %486, %490 : vector<2x32xf32>
    %492 = tpu.concatenate %491, %455 in 1 : vector<2x32xf32>, vector<2x32xf32> -> vector<2x64xf32>
    %cst_92 = arith.constant dense<0.000000e+00> : vector<2x128xf32>
    %493 = tpu.matmul %492, %4, %cst_92 {dimension_numbers = #tpu.dot_dimension_numbers<[1], [0], [0], [1], [0, 0, 1, 1], [], []>} : vector<2x64xf32>, vector<64x128xf32>, vector<2x128xf32> -> vector<2x128xf32>
    %494 = arith.addf %493, %7 : vector<2x128xf32>
    %495 = vector.extract_strided_slice %494 {offsets = [0, 0], sizes = [2, 32], strides = [1, 1]} : vector<2x128xf32> to vector<2x32xf32>
    %496 = arith.negf %495 : vector<2x32xf32>
    %497 = math.exp %496 : vector<2x32xf32>
    %cst_93 = arith.constant 1.000000e+00 : f32
    %498 = vector.broadcast %cst_93 : f32 to vector<2x32xf32>
    %499 = arith.addf %498, %497 : vector<2x32xf32>
    %500 = arith.divf %498, %499 : vector<2x32xf32>
    %501 = vector.extract_strided_slice %494 {offsets = [0, 32], sizes = [2, 32], strides = [1, 1]} : vector<2x128xf32> to vector<2x32xf32>
    %502 = arith.negf %501 : vector<2x32xf32>
    %503 = math.exp %502 : vector<2x32xf32>
    %cst_94 = arith.constant 1.000000e+00 : f32
    %504 = vector.broadcast %cst_94 : f32 to vector<2x32xf32>
    %505 = arith.addf %504, %503 : vector<2x32xf32>
    %506 = arith.divf %504, %505 : vector<2x32xf32>
    %507 = vector.extract_strided_slice %494 {offsets = [0, 64], sizes = [2, 32], strides = [1, 1]} : vector<2x128xf32> to vector<2x32xf32>
    %508 = math.tanh %507 : vector<2x32xf32>
    %509 = vector.extract_strided_slice %494 {offsets = [0, 96], sizes = [2, 32], strides = [1, 1]} : vector<2x128xf32> to vector<2x32xf32>
    %510 = arith.negf %509 : vector<2x32xf32>
    %511 = math.exp %510 : vector<2x32xf32>
    %cst_95 = arith.constant 1.000000e+00 : f32
    %512 = vector.broadcast %cst_95 : f32 to vector<2x32xf32>
    %513 = arith.addf %512, %511 : vector<2x32xf32>
    %514 = arith.divf %512, %513 : vector<2x32xf32>
    %515 = arith.mulf %506, %453 : vector<2x32xf32>
    %516 = arith.mulf %500, %508 : vector<2x32xf32>
    %517 = arith.addf %515, %516 : vector<2x32xf32>
    %518 = math.tanh %517 : vector<2x32xf32>
    %519 = arith.mulf %514, %518 : vector<2x32xf32>
    %520 = arith.addi %8, %c7_i32 : i32
    %521 = arith.index_cast %520 : i32 to index
    %522 = memref.load %arg5[%521] : memref<8xf32, #tpu.memory_space<smem>>
    %523 = vector.broadcast %522 : f32 to vector<2x32xf32>
    %524 = arith.mulf %519, %523 : vector<2x32xf32>
    %525 = arith.addf %461, %524 : vector<2x32xf32>
    %c8_i32_96 = arith.constant 8 : i32
    %c0_97 = arith.constant 0 : index
    %c0_98 = arith.constant 0 : index
    %526 = vector.load %arg8[%c0_97, %c0_98] : memref<2x32xf32, #tpu.memory_space<vmem>>, vector<2x32xf32>
    tpu.vector_store %arg8[%c0_97, %c0_98], %491 {strides = array<i32>} : memref<2x32xf32, #tpu.memory_space<vmem>>, vector<2x32xf32>,
    %c0_99 = arith.constant 0 : index
    %c0_100 = arith.constant 0 : index
    %527 = vector.load %arg9[%c0_99, %c0_100] : memref<2x32xf32, #tpu.memory_space<vmem>>, vector<2x32xf32>
    tpu.vector_store %arg9[%c0_99, %c0_100], %489 {strides = array<i32>} : memref<2x32xf32, #tpu.memory_space<vmem>>, vector<2x32xf32>,
    %c0_101 = arith.constant 0 : index
    %c0_102 = arith.constant 0 : index
    %528 = vector.load %arg10[%c0_101, %c0_102] : memref<2x32xf32, #tpu.memory_space<vmem>>, vector<2x32xf32>
    tpu.vector_store %arg10[%c0_101, %c0_102], %519 {strides = array<i32>} : memref<2x32xf32, #tpu.memory_space<vmem>>, vector<2x32xf32>,
    %c0_103 = arith.constant 0 : index
    %c0_104 = arith.constant 0 : index
    %529 = vector.load %arg11[%c0_103, %c0_104] : memref<2x32xf32, #tpu.memory_space<vmem>>, vector<2x32xf32>
    tpu.vector_store %arg11[%c0_103, %c0_104], %517 {strides = array<i32>} : memref<2x32xf32, #tpu.memory_space<vmem>>, vector<2x32xf32>,
    %c0_105 = arith.constant 0 : index
    %c0_106 = arith.constant 0 : index
    %530 = vector.load %arg7[%c0_105, %c0_106] : memref<2x32xf32, #tpu.memory_space<vmem>>, vector<2x32xf32>
    tpu.vector_store %arg7[%c0_105, %c0_106], %525 {strides = array<i32>} : memref<2x32xf32, #tpu.memory_space<vmem>>, vector<2x32xf32>,
    %c0_i32_107 = arith.constant 0 : i32
    %531 = arith.cmpi eq, %arg0, %c0_i32_107 : i32
    %532 = arith.extui %531 : i1 to i32
    %c0_i32_108 = arith.constant 0 : i32
    %533 = arith.cmpi ne, %532, %c0_i32_108 : i32
    scf.if %533 {
      %c0_109 = arith.constant 0 : index
      %c0_110 = arith.constant 0 : index
      %534 = vector.load %arg7[%c0_109, %c0_110] : memref<2x32xf32, #tpu.memory_space<vmem>>, vector<2x32xf32>
      %c0_111 = arith.constant 0 : index
      %535 = memref.load %arg6[%c0_111] : memref<1xf32, #tpu.memory_space<smem>>
      %536 = vector.broadcast %535 : f32 to vector<2x32xf32>
      %537 = arith.addf %534, %536 : vector<2x32xf32>
      %c0_112 = arith.constant 0 : index
      %c0_113 = arith.constant 0 : index
      %538 = vector.load %arg7[%c0_112, %c0_113] : memref<2x32xf32, #tpu.memory_space<vmem>>, vector<2x32xf32>
      tpu.vector_store %arg7[%c0_112, %c0_113], %537 {strides = array<i32>} : memref<2x32xf32, #tpu.memory_space<vmem>>, vector<2x32xf32>,
    } else {
    }
    return
  }
  func.func @transform_0(%arg0: i32) -> (i32, i32, i32) {
    %c0_i32 = arith.constant 0 : i32
    %c0_i32_0 = arith.constant 0 : i32
    %c0_i32_1 = arith.constant 0 : i32
    return %arg0, %c0_i32, %c0_i32_0 : i32, i32, i32
  }
  func.func @transform_1(%arg0: i32) -> (i32, i32) {
    %c0_i32 = arith.constant 0 : i32
    %c0_i32_0 = arith.constant 0 : i32
    %c0_i32_1 = arith.constant 0 : i32
    return %c0_i32, %c0_i32_0 : i32, i32
  }
  func.func @transform_2(%arg0: i32) -> (i32, i32) {
    %c0_i32 = arith.constant 0 : i32
    %c0_i32_0 = arith.constant 0 : i32
    %c0_i32_1 = arith.constant 0 : i32
    return %c0_i32, %c0_i32_0 : i32, i32
  }
  func.func @transform_3(%arg0: i32) -> (i32, i32) {
    %c0_i32 = arith.constant 0 : i32
    %c0_i32_0 = arith.constant 0 : i32
    %c0_i32_1 = arith.constant 0 : i32
    return %c0_i32, %c0_i32_0 : i32, i32
  }
  func.func @transform_4(%arg0: i32) -> i32 {
    %c0_i32 = arith.constant 0 : i32
    %c0_i32_0 = arith.constant 0 : i32
    return %c0_i32 : i32
  }
  func.func @transform_5(%arg0: i32) -> i32 {
    %c0_i32 = arith.constant 0 : i32
    %c0_i32_0 = arith.constant 0 : i32
    return %c0_i32 : i32
  }
  func.func @transform_6(%arg0: i32) -> (i32, i32) {
    %c0_i32 = arith.constant 0 : i32
    %c0_i32_0 = arith.constant 0 : i32
    %c0_i32_1 = arith.constant 0 : i32
    return %c0_i32, %c0_i32_0 : i32, i32
  }
}

</mosaic_0001>

<bundles_post_ra>
// kernel: decoder_forward.1
= control target key start
LH: loop header
LB: loop body
LE: loop exit
PB: predicated region body
PF: predicated region fallthrough
CT: control target
= control target key end

     0   :  { %12 = vsyncpa [#allocation9], 0  ;;  %s1903_s0 = inlined_call_operand.vmem [shape: f32[8,2,128], index: 0, kind: input, shape index: {}]   ;;  %s1904_s1 = inlined_call_operand.vmem [shape: f32[32,128], index: 1, kind: input, shape index: {}]   ;;  %s1905_s2 = inlined_call_operand.vmem [shape: f32[64,128], index: 2, kind: input, shape index: {}]   ;;  %s1906_s3 = inlined_call_operand.vmem [shape: f32[1,128], index: 3, kind: input, shape index: {}]   ;;  %s1907_s4 = inlined_call_operand.vmem [shape: f32[8], index: 4, kind: input, shape index: {}]   ;;  %s1908_s5 = inlined_call_operand.<no memory space> [shape: f32[1], index: 5, kind: input, shape index: {}]   ;;  %s1909_s6 = inlined_call_operand.hbm [shape: f32[2,32], index: 6, kind: output, shape index: {}]  }
   0x1   :  { %13 = vsyncpa [#allocation8], 0  ;;  %s27_s23 = sshll.u32 %s1907_s4, 4  ;;  %s1464_s24 = smov [#allocation7]   ;;  %s28_s23 = int_to_ptr.vmem [resolvable:$true] %s27_s23 }
   0x2   :  { %30 = dma.vmem_to_smem %s28_s23, 16, %s1464_s24, [#allocation9]  }
   0x3   :  { %1460 = dma.done.wait [#allocation9], 16  }
   0x4   :  { %1461 = vsyncadd [#allocation9], 4294967280 }
   0x5   :  { %37 = sfence }
   0x6   :  { %v1511_v0 = vld [vmem:[%s1904_s1 + $0x18] sm:$0xff]  ;;  %v1516_v1 = vld [vmem:[%s1904_s1 + $0x10] sm:$0xff]  ;;  %vm42_vm0 = vcmask 254976   ;;  %v1465_v2 = vmov 0.0   ;;  %v1524_v3 = vld [vmem:[%s1904_s1 + $0x8] sm:$0xff]  ;;  %vm71_vm1 = vcmask 261120  }
   0x7   :  { %87 = vmatpush.msra.mxu0 %v1511_v0  ;;  %43 = vst.msk [vmem:[#allocation2] sm:$0x3] %vm42_vm0, %v1465_v2  ;;  %235 = vmatpush.msra.mxu2 %v1511_v0  ;;  %v1533_v4 = vld [vmem:[%s1904_s1] sm:$0xff]  ;;  %s1466_s9 = smov 64   ;;  %s1467_s10 = smov 32   ;;  %v1563_v31 = vld [vmem:[%s1905_s2 + $0x38] sm:$0xff] }
   0x8   :  { %44 = vst.msk [vmem:[#allocation3] sm:$0x3] %vm42_vm0, %v1465_v2  ;;  %v70_v6 = vld [vmem:[%s1903_s0] sm:$0x3]  ;;  %v1568_v32 = vld [vmem:[%s1905_s2 + $0x30] sm:$0xff]  ;;  %158 = vmatpush.msra.mxu1 %v1563_v31  ;;  %301 = vmatpush.msra.mxu3 %v1563_v31  ;;  %v1575_v33 = vld [vmem:[%s1905_s2 + $0x28] sm:$0xff] }
   0x9   :  { %88 = vmatpush.msra.mxu0 %v1516_v1  ;;  %45 = vst.msk [vmem:[#allocation4] sm:$0x3] %vm42_vm0, %v1465_v2  ;;  %236 = vmatpush.msra.mxu2 %v1516_v1  ;;  %v1589_v37 = vld [vmem:[%s1905_s2 + $0x20] sm:$0xff]  ;;  %v1595_v38 = vld [vmem:[%s1905_s2 + $0x18] sm:$0xff]  ;;  %v1601_v39 = vld [vmem:[%s1905_s2 + $0x10] sm:$0xff]  ;;  %vm146_vm6 = vcmask 523264  }
   0xa   :  { %46 = vst.msk [vmem:[#allocation5] sm:$0x3] %vm42_vm0, %v1465_v2  ;;  %159 = vmatpush.msra.mxu1 %v1568_v32  ;;  %302 = vmatpush.msra.mxu3 %v1568_v32  ;;  %v1609_v40 = vld [vmem:[%s1905_s2 + $0x8] sm:$0xff]  ;;  %v1620_v41 = vld [vmem:[%s1905_s2] sm:$0xff]  ;;  %s211_s19 = sld [smem:[#allocation7]]  ;;  %s1468_s25 = smov 96  }
   0xb   :  { %89 = vmatpush.msra.mxu0 %v1524_v3  ;;  %47 = vst.msk [vmem:[#allocation10] sm:$0x3] %vm42_vm0, %v1465_v2  ;;  %237 = vmatpush.msra.mxu2 %v1524_v3  ;;  %v1246_v46 = vld [vmem:[%s1903_s0 + $0x2] sm:$0x3]  ;;  %v1660_v48 = vld [vmem:[%s1906_s3] ss:$0 sm:$0xff] }
   0xc   :  { %160 = vmatpush.msra.mxu1 %v1575_v33  ;;  %303 = vmatpush.msra.mxu3 %v1575_v33  ;;  %s1263_s20 = sld [smem:[#allocation7 + $0x3]]  ;;  %s1469_s2 = smov [#allocation10]  }
   0xd   :  { %90 = vmatpush.msra.mxu0 %v1533_v4  ;;  %238 = vmatpush.msra.mxu2 %v1533_v4  ;;  %s1281_s21 = sld [smem:[#allocation7 + $0x6]]  ;;  %s1230_s27 = sshll.u32 %s1469_s2, 4  ;;  %s1231_s27 = int_to_ptr.vmem [resolvable:$true] %s1230_s27 }
   0xe   :  { %v65_v5 = vld [vmem:[#allocation2] sm:$0x3]  ;;  %161 = vmatpush.msra.mxu1 %v1589_v37  ;;  %304 = vmatpush.msra.mxu3 %v1589_v37  ;;  %s1269_s22 = sld [smem:[#allocation7 + $0x4]]  ;;  %s1232_s29 = sshll.u32 %s1909_s6, 4  ;;  %s1233_s29 = int_to_ptr.hbm [resolvable:$true] %s1232_s29 }
   0xf   :  { %375 = vmatpush.msrb.mxu0 %v1511_v0  ;;  %v66_v10 = vld [vmem:[#allocation3] sm:$0x3]  ;;  %441 = vmatpush.msrb.mxu2 %v1563_v31  ;;  %s1257_s23 = sld [smem:[#allocation7 + $0x2]] }
  0x10   :  { %1242 = vmatmul.msk.f32.vlgmr.msra.gmra.mxu0 %vm71_vm1, %v65_v5  ;;  %v67_v36 = vld [vmem:[#allocation4] sm:$0x3]  ;;  %162 = vmatpush.msra.mxu1 %v1595_v38  ;;  %s1275_s24 = sld [smem:[#allocation7 + $0x5]] }
  0x11   :  { %376 = vmatpush.msrb.mxu0 %v1516_v1  ;;  %442 = vmatpush.msrb.mxu2 %v1568_v32  ;;  %v68_v42 = vld [vmem:[#allocation5] sm:$0x3]  ;;  %s1287_s26 = sld [smem:[#allocation7 + $0x7]] }
  0x12   :  { %305 = vmatpush.msra.mxu3 %v1595_v38  ;;  %163 = vmatpush.msra.mxu1 %v1601_v39 }
  0x13   :  { %377 = vmatpush.msrb.mxu0 %v1524_v3  ;;  %443 = vmatpush.msrb.mxu2 %v1575_v33 }
  0x14   :  { %306 = vmatpush.msra.mxu3 %v1601_v39  ;;  %164 = vmatpush.msra.mxu1 %v1609_v40 }
  0x15   :  { %378 = vmatpush.msrb.mxu0 %v1533_v4  ;;  %444 = vmatpush.msrb.mxu2 %v1589_v37 }
  0x16   :  { %307 = vmatpush.msra.mxu3 %v1609_v40  ;;  %165 = vmatpush.msra.mxu1 %v1620_v41 }
  0x17   :  { %515 = vmatpush.msra.mxu0 %v1511_v0  ;;  %445 = vmatpush.msrb.mxu2 %v1595_v38 }
  0x18   :  { %308 = vmatpush.msra.mxu3 %v1620_v41  ;;  %581 = vmatpush.msrb.mxu1 %v1563_v31 }
  0x19   :  { %516 = vmatpush.msra.mxu0 %v1516_v1  ;;  %446 = vmatpush.msrb.mxu2 %v1601_v39 }
  0x1a   :  { %655 = vmatpush.msrb.mxu3 %v1511_v0  ;;  %582 = vmatpush.msrb.mxu1 %v1568_v32 }
  0x1b   :  { %517 = vmatpush.msra.mxu0 %v1524_v3  ;;  %447 = vmatpush.msrb.mxu2 %v1609_v40 }
  0x1c   :  { %656 = vmatpush.msrb.mxu3 %v1516_v1  ;;  %583 = vmatpush.msrb.mxu1 %v1575_v33 }
  0x1d   :  { %518 = vmatpush.msra.mxu0 %v1533_v4  ;;  %448 = vmatpush.msrb.mxu2 %v1620_v41 }
  0x1e   :  { %657 = vmatpush.msrb.mxu3 %v1524_v3  ;;  %584 = vmatpush.msrb.mxu1 %v1589_v37 }
  0x20   :  { %658 = vmatpush.msrb.mxu3 %v1533_v4  ;;  %585 = vmatpush.msrb.mxu1 %v1595_v38 }
  0x22   :  { %586 = vmatpush.msrb.mxu1 %v1601_v39 }
  0x24   :  { %587 = vmatpush.msrb.mxu1 %v1609_v40 }
  0x26   :  { %588 = vmatpush.msrb.mxu1 %v1620_v41 }
  0x8d   :  { %v92_v7 = vpop.f32.mrf.mxu0 }
  0x8e   :  { %v95_v8 = vadd.f32 %v92_v7, %v70_v6 }
  0x90   :  { %1295 = vtanh.f32 %v95_v8  ;;  %v1243_v11 = vmul.f32 -1.442695, %v95_v8 }
  0x92   :  { %1297 = vpow2.f32 %v1243_v11 }
  0x96   :  { %v1296_v9 = vpop.eup %1295 }
  0x97   :  { %122 = vrot.lane.b32.xlu0 %v1296_v9, %s1466_s9 }
  0x98   :  { %v1298_v12 = vpop.eup %1297 }
  0x99   :  { %v99_v13 = vadd.f32 1.0, %v1298_v12 }
  0x9b   :  { %1299 = vrcp.f32 %v99_v13  ;;  %v111_v19 = vand.u32 2147483648, %v99_v13  ;;  %vm105_vm3 = vweird.f32 %v99_v13  ;;  %v109_v20 = vand.u32 2147483647, %v99_v13 }
  0x9d   :  { %v112_v22 = vor.u32 1.1754944e-38, %v111_v19  ;;  %vm110_vm5 = vcmp.eq.f32.partialorder %v109_v20, 8.507059e+37 }
  0x9f   :  { %117 = vrot.lane.b32.xlu0 %v66_v10, %s1467_s10 }
  0xa1   :  { %v1300_v14 = vpop.eup %1299 }
  0xa2   :  { %v101_v15 = vmul.f32 %v1300_v14, %v99_v13  ;;  %vm106_vm2 = vweird.f32 %v1300_v14 }
  0xa3   :  { %vm107_vm4 = vmor %vm105_vm3, %vm106_vm2 }
  0xa4   :  { %v102_v16 = vsub.f32 1.0, %v101_v15 }
  0xa6   :  { %v103_v17 = vmul.f32 %v1300_v14, %v102_v16 }
  0xa8   :  { %v104_v18 = vadd.f32 %v1300_v14, %v103_v17 }
  0xaa   :  { %v108_v21 = vsel %vm107_vm4, %v1300_v14, %v104_v18 }
  0xab   :  { %v113_v24 = vsel %vm110_vm5, %v112_v22, %v108_v21 }
 0x109   :  { %v123_v23 = vpop.permute.xlu0 %122 }
 0x10a   :  { %v125_v25 = vmul.f32 %v123_v23, %v113_v24 }
 0x10c   :  { %127 = vrot.lane.b32.xlu1 %v125_v25, %s1467_s10 }
 0x111   :  { %v118_v26 = vpop.permute.xlu0 %117 }
 0x112   :  { %v120_v27 = vmul.f32 %v118_v26, %v113_v24 }
 0x17e   :  { %v128_v28 = vpop.permute.xlu1 %127 }
 0x17f   :  { %v1556_v29 = vadd.f32 %v128_v28, %v120_v27 }
 0x181   :  { %1301 = vtanh.f32 %v1556_v29 }
 0x187   :  { %v1302_v30 = vpop.eup %1301 }
 0x188   :  { %133 = vrot.lane.b32.xlu1 %v1302_v30, %s1466_s9 }
 0x1fa   :  { %v134_v34 = vpop.permute.xlu1 %133 }
 0x1fb   :  { %v136_v35 = vmul.f32 %v134_v34, %v113_v24 }
 0x1fd   :  { %138 = vrot.lane.b32.xlu2 %v136_v35, %s1467_s10 }
 0x205   :  { %142 = vrot.lane.b32.xlu2 %v67_v36, %s1467_s10 }
 0x20d   :  { %191 = vrot.lane.b32.xlu2 %v68_v42, %s1467_s10 }
 0x257   :  { %v139_v43 = vpop.permute.xlu2 %138 }
 0x258   :  { %1247 = vmatmul.msk.f32.vlgmr.msra.gmra.mxu2 %vm71_vm1, %v139_v43 }
 0x259   :  { %795 = vmatpush.msra.mxu2 %v1511_v0 }
 0x25b   :  { %796 = vmatpush.msra.mxu2 %v1516_v1 }
 0x25d   :  { %797 = vmatpush.msra.mxu2 %v1524_v3 }
 0x25f   :  { %v143_v44 = vpop.permute.xlu2 %142  ;;  %798 = vmatpush.msra.mxu2 %v1533_v4 }
 0x260   :  { %v145_v45 = vsel %vm71_vm1, %v139_v43, %v143_v44 }
 0x261   :  { %1244 = vmatmul.msk.f32.vlgmr.msra.gmra.mxu1 %vm146_vm6, %v145_v45 }
 0x262   :  { %1141 = vmatpush.msra.mxu1 %v1563_v31 }
 0x264   :  { %1142 = vmatpush.msra.mxu1 %v1568_v32 }
 0x266   :  { %1143 = vmatpush.msra.mxu1 %v1575_v33 }
 0x267   :  { %v192_v24 = vpop.permute.xlu2 %191 }
 0x268   :  { %1144 = vmatpush.msra.mxu1 %v1589_v37 }
 0x26a   :  { %1145 = vmatpush.msra.mxu1 %v1595_v38 }
 0x26c   :  { %1146 = vmatpush.msra.mxu1 %v1601_v39 }
 0x26e   :  { %1147 = vmatpush.msra.mxu1 %v1609_v40 }
 0x270   :  { %1148 = vmatpush.msra.mxu1 %v1620_v41 }
 0x2db   :  { %v240_v47 = vpop.f32.mrf.mxu2 }
 0x2dc   :  { %v243_v49 = vadd.f32 %v1246_v46, %v240_v47 }
 0x2de   :  { %1303 = vtanh.f32 %v243_v49  ;;  %v167_v50 = vpop.f32.mrf.mxu1  ;;  %v1248_v54 = vmul.f32 -1.442695, %v243_v49  ;;  %v1252_v49 = vld [vmem:[%s1903_s0 + $0x4] sm:$0x3] }
 0x2df   :  { %v168_v51 = vadd.f32 %v1660_v48, %v167_v50 }
 0x2e1   :  { %1305 = vtanh.f32 %v168_v51  ;;  %v1245_v55 = vmul.f32 -1.442695, %v168_v51 }
 0x2e2   :  { %1307 = vpow2.f32 %v1248_v54 }
 0x2e3   :  { %1309 = vpow2.f32 %v1245_v55 }
 0x2e4   :  { %v1304_v52 = vpop.eup %1303 }
 0x2e5   :  { %266 = vrot.lane.b32.xlu1 %v1304_v52, %s1466_s9 }
 0x2e7   :  { %v1306_v53 = vpop.eup %1305 }
 0x2e8   :  { %196 = vrot.lane.b32.xlu0 %v1306_v53, %s1466_s9  ;;  %v1308_v56 = vpop.eup %1307 }
 0x2e9   :  { %v1310_v57 = vpop.eup %1309  ;;  %v247_v58 = vadd.f32 1.0, %v1308_v56 }
 0x2ea   :  { %v173_v59 = vadd.f32 1.0, %v1310_v57 }
 0x2eb   :  { %1311 = vrcp.f32 %v247_v58  ;;  %v259_v9 = vand.u32 2147483648, %v247_v58  ;;  %vm253_vm8 = vweird.f32 %v247_v58  ;;  %v257_v10 = vand.u32 2147483647, %v247_v58 }
 0x2ec   :  { %1313 = vrcp.f32 %v173_v59  ;;  %v185_v12 = vand.u32 2147483648, %v173_v59  ;;  %vm179_vm11 = vweird.f32 %v173_v59  ;;  %v183_v14 = vand.u32 2147483647, %v173_v59 }
 0x2ed   :  { %v260_v15 = vor.u32 1.1754944e-38, %v259_v9  ;;  %vm258_vm13 = vcmp.eq.f32.partialorder %v257_v10, 8.507059e+37 }
 0x2ee   :  { %v186_v19 = vor.u32 1.1754944e-38, %v185_v12  ;;  %vm184_vm14 = vcmp.eq.f32.partialorder %v183_v14, 8.507059e+37 }
 0x2f1   :  { %v1312_v60 = vpop.eup %1311 }
 0x2f2   :  { %v1314_v61 = vpop.eup %1313  ;;  %v249_v62 = vmul.f32 %v1312_v60, %v247_v58  ;;  %vm254_vm7 = vweird.f32 %v1312_v60 }
 0x2f3   :  { %v175_v63 = vmul.f32 %v1314_v61, %v173_v59  ;;  %vm180_vm9 = vweird.f32 %v1314_v61  ;;  %vm255_vm10 = vmor %vm253_vm8, %vm254_vm7 }
 0x2f4   :  { %v250_v2 = vsub.f32 1.0, %v249_v62  ;;  %vm181_vm12 = vmor %vm179_vm11, %vm180_vm9 }
 0x2f5   :  { %v176_v5 = vsub.f32 1.0, %v175_v63 }
 0x2f6   :  { %v251_v6 = vmul.f32 %v1312_v60, %v250_v2 }
 0x2f7   :  { %v177_v7 = vmul.f32 %v1314_v61, %v176_v5 }
 0x2f8   :  { %v252_v8 = vadd.f32 %v1312_v60, %v251_v6 }
 0x2f9   :  { %v178_v11 = vadd.f32 %v1314_v61, %v177_v7 }
 0x2fa   :  { %v256_v13 = vsel %vm255_vm10, %v1312_v60, %v252_v8 }
 0x2fb   :  { %v182_v16 = vsel %vm181_vm12, %v1314_v61, %v178_v11  ;;  %v261_v18 = vsel %vm258_vm13, %v260_v15, %v256_v13 }
 0x2fc   :  { %v187_v21 = vsel %vm184_vm14, %v186_v19, %v182_v16  ;;  %v264_v25 = vmul.f32 %v261_v18, %v1556_v29 }
 0x2fd   :  { %v194_v28 = vmul.f32 %v192_v24, %v187_v21 }
 0x357   :  { %v267_v17 = vpop.permute.xlu1 %266 }
 0x358   :  { %v269_v20 = vmul.f32 %v267_v17, %v261_v18 }
 0x35a   :  { %271 = vrot.lane.b32.xlu1 %v269_v20, %s1467_s10  ;;  %v197_v22 = vpop.permute.xlu0 %196 }
 0x35b   :  { %v199_v23 = vmul.f32 %v197_v22, %v187_v21 }
 0x35d   :  { %201 = vrot.lane.b32.xlu0 %v199_v23, %s1467_s10 }
 0x3cc   :  { %v272_v26 = vpop.permute.xlu1 %271 }
 0x3cd   :  { %v1668_v27 = vadd.f32 %v272_v26, %v264_v25 }
 0x3cf   :  { %1315 = vtanh.f32 %v1668_v27  ;;  %v202_v30 = vpop.permute.xlu0 %201 }
 0x3d0   :  { %v1671_v34 = vadd.f32 %v202_v30, %v194_v28 }
 0x3d2   :  { %1317 = vtanh.f32 %v1671_v34 }
 0x3d5   :  { %v1316_v35 = vpop.eup %1315 }
 0x3d6   :  { %277 = vrot.lane.b32.xlu0 %v1316_v35, %s1466_s9 }
 0x3d8   :  { %v1318_v36 = vpop.eup %1317 }
 0x3d9   :  { %207 = vrot.lane.b32.xlu2 %v1318_v36, %s1466_s9 }
 0x433   :  { %v208_v42 = vpop.permute.xlu2 %207 }
 0x434   :  { %v1676_v43 = vmul.f32 %v208_v42, %v187_v21 }
 0x436   :  { %286 = vrot.lane.b32.xlu2 %v1676_v43, %s1466_s9 }
 0x448   :  { %v278_v29 = vpop.permute.xlu0 %277 }
 0x449   :  { %v280_v44 = vmul.f32 %v278_v29, %v261_v18 }
 0x44b   :  { %282 = vrot.lane.b32.xlu1 %v280_v44, %s1467_s10 }
 0x490   :  { %v287_v45 = vpop.permute.xlu2 %286 }
 0x4bd   :  { %v283_v46 = vpop.permute.xlu1 %282 }
 0x4be   :  { %1253 = vmatmul.msk.f32.vlgmr.msrb.gmra.mxu0 %vm71_vm1, %v283_v46  ;;  %v289_v47 = vsel %vm71_vm1, %v283_v46, %v287_v45 }
 0x4bf   :  { %1249 = vmatmul.msk.f32.vlgmr.msra.gmra.mxu3 %vm146_vm6, %v289_v47  ;;  %721 = vmatpush.msrb.mxu0 %v1563_v31 }
 0x4c0   :  { %861 = vmatpush.msra.mxu3 %v1563_v31 }
 0x4c1   :  { %722 = vmatpush.msrb.mxu0 %v1568_v32 }
 0x4c2   :  { %862 = vmatpush.msra.mxu3 %v1568_v32 }
 0x4c3   :  { %723 = vmatpush.msrb.mxu0 %v1575_v33 }
 0x4c4   :  { %863 = vmatpush.msra.mxu3 %v1575_v33 }
 0x4c5   :  { %724 = vmatpush.msrb.mxu0 %v1589_v37 }
 0x4c6   :  { %864 = vmatpush.msra.mxu3 %v1589_v37 }
 0x4c7   :  { %725 = vmatpush.msrb.mxu0 %v1595_v38 }
 0x4c8   :  { %865 = vmatpush.msra.mxu3 %v1595_v38 }
 0x4c9   :  { %726 = vmatpush.msrb.mxu0 %v1601_v39 }
 0x4ca   :  { %866 = vmatpush.msra.mxu3 %v1601_v39 }
 0x4cb   :  { %727 = vmatpush.msrb.mxu0 %v1609_v40 }
 0x4cc   :  { %867 = vmatpush.msra.mxu3 %v1609_v40 }
 0x4cd   :  { %728 = vmatpush.msrb.mxu0 %v1620_v41 }
 0x4ce   :  { %868 = vmatpush.msra.mxu3 %v1620_v41 }
 0x53b   :  { %v380_v50 = vpop.f32.mrf.mxu0 }
 0x53c   :  { %v383_v51 = vadd.f32 %v1252_v49, %v380_v50 }
 0x53e   :  { %1319 = vtanh.f32 %v383_v51  ;;  %v1254_v56 = vmul.f32 -1.442695, %v383_v51  ;;  %v1258_v51 = vld [vmem:[%s1903_s0 + $0x6] sm:$0x3] }
 0x542   :  { %v310_v52 = vpop.f32.mrf.mxu3 }
 0x543   :  { %v311_v53 = vadd.f32 %v1660_v48, %v310_v52 }
 0x544   :  { %v1320_v54 = vpop.eup %1319 }
 0x545   :  { %1321 = vtanh.f32 %v311_v53  ;;  %406 = vrot.lane.b32.xlu0 %v1320_v54, %s1466_s9  ;;  %v1250_v57 = vmul.f32 -1.442695, %v311_v53 }
 0x546   :  { %1323 = vpow2.f32 %v1254_v56 }
 0x547   :  { %1325 = vpow2.f32 %v1250_v57 }
 0x54b   :  { %v1322_v55 = vpop.eup %1321 }
 0x54c   :  { %335 = vrot.lane.b32.xlu1 %v1322_v55, %s1466_s9  ;;  %v1324_v58 = vpop.eup %1323 }
 0x54d   :  { %v387_v59 = vadd.f32 1.0, %v1324_v58  ;;  %v1326_v60 = vpop.eup %1325 }
 0x54e   :  { %v316_v61 = vadd.f32 1.0, %v1326_v60 }
 0x54f   :  { %1327 = vrcp.f32 %v387_v59  ;;  %v399_v10 = vand.u32 2147483648, %v387_v59  ;;  %vm393_vm2 = vweird.f32 %v387_v59  ;;  %v397_v11 = vand.u32 2147483647, %v387_v59 }
 0x550   :  { %1329 = vrcp.f32 %v316_v61  ;;  %v328_v19 = vand.u32 2147483648, %v316_v61  ;;  %vm322_vm7 = vweird.f32 %v316_v61  ;;  %v326_v20 = vand.u32 2147483647, %v316_v61 }
 0x551   :  { %v400_v14 = vor.u32 1.1754944e-38, %v399_v10  ;;  %vm398_vm4 = vcmp.eq.f32.partialorder %v397_v11, 8.507059e+37 }
 0x552   :  { %v329_v22 = vor.u32 1.1754944e-38, %v328_v19  ;;  %vm327_vm9 = vcmp.eq.f32.partialorder %v326_v20, 8.507059e+37 }
 0x555   :  { %v1328_v62 = vpop.eup %1327 }
 0x556   :  { %v389_v63 = vmul.f32 %v1328_v62, %v387_v59  ;;  %v1330_v2 = vpop.eup %1329  ;;  %vm394_vm15 = vweird.f32 %v1328_v62 }
 0x557   :  { %v318_v6 = vmul.f32 %v1330_v2, %v316_v61  ;;  %vm395_vm3 = vmor %vm393_vm2, %vm394_vm15  ;;  %vm323_vm5 = vweird.f32 %v1330_v2 }
 0x558   :  { %v390_v5 = vsub.f32 1.0, %v389_v63  ;;  %vm324_vm8 = vmor %vm322_vm7, %vm323_vm5 }
 0x559   :  { %v319_v8 = vsub.f32 1.0, %v318_v6 }
 0x55a   :  { %v391_v7 = vmul.f32 %v1328_v62, %v390_v5 }
 0x55b   :  { %v320_v12 = vmul.f32 %v1330_v2, %v319_v8 }
 0x55c   :  { %v392_v9 = vadd.f32 %v1328_v62, %v391_v7 }
 0x55d   :  { %v321_v17 = vadd.f32 %v1330_v2, %v320_v12 }
 0x55e   :  { %v396_v13 = vsel %vm395_vm3, %v1328_v62, %v392_v9 }
 0x55f   :  { %v401_v16 = vsel %vm398_vm4, %v400_v14, %v396_v13  ;;  %v325_v21 = vsel %vm324_vm8, %v1330_v2, %v321_v17 }
 0x560   :  { %v330_v24 = vsel %vm327_vm9, %v329_v22, %v325_v21  ;;  %v404_v26 = vmul.f32 %v401_v16, %v1668_v27 }
 0x561   :  { %v333_v36 = vmul.f32 %v330_v24, %v1671_v34 }
 0x5b7   :  { %v407_v15 = vpop.permute.xlu0 %406 }
 0x5b8   :  { %v409_v18 = vmul.f32 %v407_v15, %v401_v16 }
 0x5ba   :  { %411 = vrot.lane.b32.xlu2 %v409_v18, %s1467_s10 }
 0x5be   :  { %v336_v23 = vpop.permute.xlu1 %335 }
 0x5bf   :  { %v338_v25 = vmul.f32 %v336_v23, %v330_v24 }
 0x5c1   :  { %340 = vrot.lane.b32.xlu0 %v338_v25, %s1467_s10 }
 0x614   :  { %v412_v28 = vpop.permute.xlu2 %411 }
 0x615   :  { %v1709_v30 = vadd.f32 %v412_v28, %v404_v26 }
 0x617   :  { %1331 = vtanh.f32 %v1709_v30 }
 0x61d   :  { %v1332_v35 = vpop.eup %1331 }
 0x61e   :  { %417 = vrot.lane.b32.xlu1 %v1332_v35, %s1466_s9 }
 0x633   :  { %v341_v42 = vpop.permute.xlu0 %340 }
 0x634   :  { %v1714_v29 = vadd.f32 %v341_v42, %v333_v36 }
 0x636   :  { %1333 = vtanh.f32 %v1714_v29 }
 0x63c   :  { %v1334_v44 = vpop.eup %1333 }
 0x63d   :  { %346 = vrot.lane.b32.xlu2 %v1334_v44, %s1466_s9 }
 0x690   :  { %v418_v45 = vpop.permute.xlu1 %417 }
 0x691   :  { %v420_v27 = vmul.f32 %v418_v45, %v401_v16 }
 0x693   :  { %422 = vrot.lane.b32.xlu0 %v420_v27, %s1467_s10  ;;  %v1264_v27 = vld [vmem:[%s1903_s0 + $0x8] sm:$0x3] }
 0x697   :  { %v347_v46 = vpop.permute.xlu2 %346 }
 0x698   :  { %v1719_v47 = vmul.f32 %v347_v46, %v330_v24 }
 0x69a   :  { %426 = vrot.lane.b32.xlu1 %v1719_v47, %s1466_s9 }
 0x705   :  { %v423_v49 = vpop.permute.xlu0 %422 }
 0x706   :  { %1259 = vmatmul.msk.f32.vlgmr.msra.gmra.mxu0 %vm71_vm1, %v423_v49 }
 0x707   :  { %1075 = vmatpush.msra.mxu0 %v1511_v0 }
 0x709   :  { %1076 = vmatpush.msra.mxu0 %v1516_v1 }
 0x70b   :  { %1077 = vmatpush.msra.mxu0 %v1524_v3 }
 0x70c   :  { %v427_v34 = vpop.permute.xlu1 %426 }
 0x70d   :  { %v429_v50 = vsel %vm71_vm1, %v423_v49, %v427_v34  ;;  %1078 = vmatpush.msra.mxu0 %v1533_v4 }
 0x70e   :  { %1255 = vmatmul.msk.f32.vlgmr.msrb.gmra.mxu2 %vm146_vm6, %v429_v50 }
 0x70f   :  { %1001 = vmatpush.msrb.mxu2 %v1563_v31 }
 0x711   :  { %1002 = vmatpush.msrb.mxu2 %v1568_v32 }
 0x713   :  { %1003 = vmatpush.msrb.mxu2 %v1575_v33 }
 0x715   :  { %1004 = vmatpush.msrb.mxu2 %v1589_v37 }
 0x717   :  { %1005 = vmatpush.msrb.mxu2 %v1595_v38 }
 0x719   :  { %1006 = vmatpush.msrb.mxu2 %v1601_v39 }
 0x71b   :  { %1007 = vmatpush.msrb.mxu2 %v1609_v40 }
 0x71d   :  { %1008 = vmatpush.msrb.mxu2 %v1620_v41 }
 0x783   :  { %v520_v52 = vpop.f32.mrf.mxu0 }
 0x784   :  { %v523_v31 = vadd.f32 %v1258_v51, %v520_v52 }
 0x786   :  { %1335 = vtanh.f32 %v523_v31  ;;  %v1260_v39 = vmul.f32 -1.442695, %v523_v31 }
 0x78c   :  { %v1336_v32 = vpop.eup %1335 }
 0x78d   :  { %546 = vrot.lane.b32.xlu2 %v1336_v32, %s1466_s9 }
 0x791   :  { %v450_v33 = vpop.f32.mrf.mxu2 }
 0x792   :  { %v451_v37 = vadd.f32 %v1660_v48, %v450_v33 }
 0x794   :  { %1337 = vtanh.f32 %v451_v37  ;;  %v1256_v57 = vmul.f32 -1.442695, %v451_v37 }
 0x795   :  { %1339 = vpow2.f32 %v1260_v39 }
 0x79a   :  { %v1338_v38 = vpop.eup %1337 }
 0x79b   :  { %475 = vrot.lane.b32.xlu0 %v1338_v38, %s1466_s9  ;;  %v1340_v40 = vpop.eup %1339 }
 0x79c   :  { %v527_v41 = vadd.f32 1.0, %v1340_v40 }
 0x79e   :  { %1341 = vrcp.f32 %v527_v41  ;;  %v539_v59 = vand.u32 2147483648, %v527_v41  ;;  %vm533_vm11 = vweird.f32 %v527_v41  ;;  %v537_v60 = vand.u32 2147483647, %v527_v41 }
 0x79f   :  { %1343 = vpow2.f32 %v1256_v57 }
 0x7a0   :  { %v540_v62 = vor.u32 1.1754944e-38, %v539_v59  ;;  %vm538_vm13 = vcmp.eq.f32.partialorder %v537_v60, 8.507059e+37 }
 0x7a4   :  { %v1342_v53 = vpop.eup %1341 }
 0x7a5   :  { %v529_v54 = vmul.f32 %v1342_v53, %v527_v41  ;;  %vm534_vm10 = vweird.f32 %v1342_v53  ;;  %v1344_v6 = vpop.eup %1343 }
 0x7a6   :  { %vm535_vm12 = vmor %vm533_vm11, %vm534_vm10  ;;  %v456_v7 = vadd.f32 1.0, %v1344_v6 }
 0x7a7   :  { %v530_v55 = vsub.f32 1.0, %v529_v54 }
 0x7a8   :  { %1345 = vrcp.f32 %v456_v7  ;;  %v468_v13 = vand.u32 2147483648, %v456_v7  ;;  %vm462_vm15 = vweird.f32 %v456_v7  ;;  %v466_v14 = vand.u32 2147483647, %v456_v7 }
 0x7a9   :  { %v531_v56 = vmul.f32 %v1342_v53, %v530_v55 }
 0x7aa   :  { %v469_v16 = vor.u32 1.1754944e-38, %v468_v13  ;;  %vm467_vm3 = vcmp.eq.f32.partialorder %v466_v14, 8.507059e+37 }
 0x7ab   :  { %v532_v58 = vadd.f32 %v1342_v53, %v531_v56 }
 0x7ad   :  { %v536_v61 = vsel %vm535_vm12, %v1342_v53, %v532_v58 }
 0x7ae   :  { %v541_v63 = vsel %vm538_vm13, %v540_v62, %v536_v61  ;;  %v1346_v8 = vpop.eup %1345 }
 0x7af   :  { %v458_v9 = vmul.f32 %v1346_v8, %v456_v7  ;;  %vm463_vm14 = vweird.f32 %v1346_v8  ;;  %v544_v20 = vmul.f32 %v541_v63, %v1709_v30 }
 0x7b0   :  { %vm464_vm2 = vmor %vm462_vm15, %vm463_vm14 }
 0x7b1   :  { %v459_v10 = vsub.f32 1.0, %v458_v9 }
 0x7b3   :  { %v460_v11 = vmul.f32 %v1346_v8, %v459_v10 }
 0x7b5   :  { %v461_v12 = vadd.f32 %v1346_v8, %v460_v11 }
 0x7b7   :  { %v465_v15 = vsel %vm464_vm2, %v1346_v8, %v461_v12 }
 0x7b8   :  { %v470_v18 = vsel %vm467_vm3, %v469_v16, %v465_v15 }
 0x7b9   :  { %v473_v24 = vmul.f32 %v470_v18, %v1714_v29 }
 0x7e7   :  { %v547_v2 = vpop.permute.xlu2 %546 }
 0x7e8   :  { %v549_v5 = vmul.f32 %v547_v2, %v541_v63 }
 0x7ea   :  { %551 = vrot.lane.b32.xlu1 %v549_v5, %s1467_s10 }
 0x80d   :  { %v476_v17 = vpop.permute.xlu0 %475 }
 0x80e   :  { %v478_v19 = vmul.f32 %v476_v17, %v470_v18 }
 0x810   :  { %480 = vrot.lane.b32.xlu2 %v478_v19, %s1467_s10 }
 0x85c   :  { %v552_v21 = vpop.permute.xlu1 %551 }
 0x85d   :  { %v1747_v22 = vadd.f32 %v552_v21, %v544_v20 }
 0x85f   :  { %1347 = vtanh.f32 %v1747_v22 }
 0x865   :  { %v1348_v23 = vpop.eup %1347 }
 0x866   :  { %557 = vrot.lane.b32.xlu0 %v1348_v23, %s1466_s9 }
 0x86a   :  { %v481_v25 = vpop.permute.xlu2 %480 }
 0x86b   :  { %v1752_v26 = vadd.f32 %v481_v25, %v473_v24 }
 0x86d   :  { %1349 = vtanh.f32 %v1752_v26 }
 0x873   :  { %v1350_v28 = vpop.eup %1349 }
 0x874   :  { %486 = vrot.lane.b32.xlu1 %v1350_v28, %s1466_s9 }
 0x8d8   :  { %v558_v35 = vpop.permute.xlu0 %557 }
 0x8d9   :  { %v560_v30 = vmul.f32 %v558_v35, %v541_v63 }
 0x8db   :  { %562 = vrot.lane.b32.xlu2 %v560_v30, %s1467_s10 }
 0x8e6   :  { %v487_v36 = vpop.permute.xlu1 %486 }
 0x8e7   :  { %v1757_v42 = vmul.f32 %v487_v36, %v470_v18 }
 0x8e9   :  { %566 = vrot.lane.b32.xlu0 %v1757_v42, %s1466_s9 }
 0x935   :  { %v563_v44 = vpop.permute.xlu2 %562 }
 0x936   :  { %1265 = vmatmul.msk.f32.vlgmr.msrb.gmra.mxu3 %vm71_vm1, %v563_v44 }
 0x937   :  { %935 = vmatpush.msrb.mxu3 %v1511_v0 }
 0x939   :  { %936 = vmatpush.msrb.mxu3 %v1516_v1 }
 0x93b   :  { %937 = vmatpush.msrb.mxu3 %v1524_v3 }
 0x93d   :  { %938 = vmatpush.msrb.mxu3 %v1533_v4 }
 0x95b   :  { %v567_v29 = vpop.permute.xlu0 %566 }
 0x95c   :  { %v569_v45 = vsel %vm71_vm1, %v563_v44, %v567_v29 }
 0x95d   :  { %1261 = vmatmul.msk.f32.vlgmr.msrb.gmra.mxu1 %vm146_vm6, %v569_v45 }
 0x9b9   :  { %v660_v46 = vpop.f32.mrf.mxu3 }
 0x9ba   :  { %v663_v49 = vadd.f32 %v1264_v27, %v660_v46 }
 0x9bc   :  { %1351 = vtanh.f32 %v663_v49  ;;  %v1266_v4 = vmul.f32 -1.442695, %v663_v49 }
 0x9c2   :  { %v1352_v34 = vpop.eup %1351 }
 0x9c3   :  { %686 = vrot.lane.b32.xlu1 %v1352_v34, %s1466_s9 }
 0x9da   :  { %v590_v0 = vpop.f32.mrf.mxu1 }
 0x9db   :  { %v591_v1 = vadd.f32 %v1660_v48, %v590_v0 }
 0x9dd   :  { %1353 = vtanh.f32 %v591_v1  ;;  %v1262_v50 = vmul.f32 -1.442695, %v591_v1 }
 0x9de   :  { %1355 = vpow2.f32 %v1266_v4 }
 0x9df   :  { %1357 = vpow2.f32 %v1262_v50 }
 0x9e3   :  { %v1354_v3 = vpop.eup %1353 }
 0x9e4   :  { %615 = vrot.lane.b32.xlu2 %v1354_v3, %s1466_s9  ;;  %v1356_v51 = vpop.eup %1355 }
 0x9e5   :  { %v667_v52 = vadd.f32 1.0, %v1356_v51  ;;  %v1358_v31 = vpop.eup %1357 }
 0x9e6   :  { %v596_v32 = vadd.f32 1.0, %v1358_v31 }
 0x9e7   :  { %1359 = vrcp.f32 %v667_v52  ;;  %v679_v54 = vand.u32 2147483648, %v667_v52  ;;  %vm673_vm5 = vweird.f32 %v667_v52  ;;  %v677_v56 = vand.u32 2147483647, %v667_v52 }
 0x9e8   :  { %1361 = vrcp.f32 %v596_v32  ;;  %v608_v2 = vand.u32 2147483648, %v596_v32  ;;  %vm602_vm10 = vweird.f32 %v596_v32  ;;  %v606_v5 = vand.u32 2147483647, %v596_v32 }
 0x9e9   :  { %v680_v58 = vor.u32 1.1754944e-38, %v679_v54  ;;  %vm678_vm8 = vcmp.eq.f32.partialorder %v677_v56, 8.507059e+37 }
 0x9ea   :  { %v609_v7 = vor.u32 1.1754944e-38, %v608_v2  ;;  %vm607_vm12 = vcmp.eq.f32.partialorder %v606_v5, 8.507059e+37 }
 0x9ed   :  { %v1360_v33 = vpop.eup %1359 }
 0x9ee   :  { %v669_v37 = vmul.f32 %v1360_v33, %v667_v52  ;;  %v1362_v39 = vpop.eup %1361  ;;  %vm674_vm4 = vweird.f32 %v1360_v33 }
 0x9ef   :  { %v598_v41 = vmul.f32 %v1362_v39, %v596_v32  ;;  %vm675_vm7 = vmor %vm673_vm5, %vm674_vm4  ;;  %vm603_vm9 = vweird.f32 %v1362_v39 }
 0x9f0   :  { %v670_v38 = vsub.f32 1.0, %v669_v37  ;;  %vm604_vm11 = vmor %vm602_vm10, %vm603_vm9 }
 0x9f1   :  { %v599_v55 = vsub.f32 1.0, %v598_v41 }
 0x9f2   :  { %v671_v40 = vmul.f32 %v1360_v33, %v670_v38 }
 0x9f3   :  { %v600_v59 = vmul.f32 %v1362_v39, %v599_v55 }
 0x9f4   :  { %v672_v53 = vadd.f32 %v1360_v33, %v671_v40 }
 0x9f5   :  { %v601_v63 = vadd.f32 %v1362_v39, %v600_v59 }
 0x9f6   :  { %v676_v57 = vsel %vm675_vm7, %v1360_v33, %v672_v53 }
 0x9f7   :  { %v681_v61 = vsel %vm678_vm8, %v680_v58, %v676_v57  ;;  %v605_v6 = vsel %vm604_vm11, %v1362_v39, %v601_v63 }
 0x9f8   :  { %v610_v9 = vsel %vm607_vm12, %v609_v7, %v605_v6  ;;  %v684_v11 = vmul.f32 %v681_v61, %v1747_v22 }
 0x9f9   :  { %v613_v14 = vmul.f32 %v610_v9, %v1752_v26  ;;  %v1270_v26 = vld [vmem:[%s1903_s0 + $0xa] sm:$0x3] }
 0xa35   :  { %v687_v60 = vpop.permute.xlu1 %686 }
 0xa36   :  { %v689_v62 = vmul.f32 %v687_v60, %v681_v61 }
 0xa38   :  { %691 = vrot.lane.b32.xlu0 %v689_v62, %s1467_s10 }
 0xa3e   :  { %v616_v8 = vpop.permute.xlu2 %615 }
 0xa3f   :  { %v618_v10 = vmul.f32 %v616_v8, %v610_v9 }
 0xa41   :  { %620 = vrot.lane.b32.xlu1 %v618_v10, %s1467_s10 }
 0xaaa   :  { %v692_v12 = vpop.permute.xlu0 %691 }
 0xaab   :  { %v1777_v13 = vadd.f32 %v692_v12, %v684_v11 }
 0xaad   :  { %1363 = vtanh.f32 %v1777_v13 }
 0xab3   :  { %v1364_v15 = vpop.eup %1363  ;;  %v621_v16 = vpop.permute.xlu1 %620 }
 0xab4   :  { %v1781_v17 = vadd.f32 %v621_v16, %v613_v14  ;;  %697 = vrot.lane.b32.xlu2 %v1364_v15, %s1466_s9 }
 0xab6   :  { %1365 = vtanh.f32 %v1781_v17 }
 0xabc   :  { %v1366_v18 = vpop.eup %1365 }
 0xabd   :  { %626 = vrot.lane.b32.xlu0 %v1366_v18, %s1466_s9 }
 0xb0e   :  { %v698_v19 = vpop.permute.xlu2 %697 }
 0xb0f   :  { %v700_v20 = vmul.f32 %v698_v19, %v681_v61 }
 0xb11   :  { %702 = vrot.lane.b32.xlu1 %v700_v20, %s1467_s10  ;;  %v1276_v20 = vld [vmem:[%s1903_s0 + $0xc] sm:$0x3] }
 0xb2f   :  { %v627_v21 = vpop.permute.xlu0 %626 }
 0xb30   :  { %v1787_v22 = vmul.f32 %v627_v21, %v610_v9 }
 0xb32   :  { %706 = vrot.lane.b32.xlu2 %v1787_v22, %s1466_s9 }
 0xb83   :  { %v703_v23 = vpop.permute.xlu1 %702 }
 0xb84   :  { %1271 = vmatmul.msk.f32.vlgmr.msra.gmra.mxu2 %vm71_vm1, %v703_v23 }
 0xb8c   :  { %v707_v24 = vpop.permute.xlu2 %706 }
 0xb8d   :  { %v709_v25 = vsel %vm71_vm1, %v703_v23, %v707_v24 }
 0xb8e   :  { %1267 = vmatmul.msk.f32.vlgmr.msrb.gmra.mxu0 %vm146_vm6, %v709_v25 }
 0xc07   :  { %v800_v28 = vpop.f32.mrf.mxu2 }
 0xc08   :  { %v803_v35 = vadd.f32 %v1270_v26, %v800_v28 }
 0xc0a   :  { %1367 = vtanh.f32 %v803_v35  ;;  %v1272_v45 = vmul.f32 -1.442695, %v803_v35 }
 0xc0b   :  { %v730_v30 = vpop.f32.mrf.mxu0 }
 0xc0c   :  { %v731_v36 = vadd.f32 %v1660_v48, %v730_v30 }
 0xc0e   :  { %1369 = vtanh.f32 %v731_v36  ;;  %v1268_v27 = vmul.f32 -1.442695, %v731_v36 }
 0xc0f   :  { %1371 = vpow2.f32 %v1272_v45 }
 0xc10   :  { %v1368_v44 = vpop.eup %1367  ;;  %1373 = vpow2.f32 %v1268_v27 }
 0xc11   :  { %826 = vrot.lane.b32.xlu1 %v1368_v44, %s1466_s9 }
 0xc14   :  { %v1370_v29 = vpop.eup %1369 }
 0xc15   :  { %755 = vrot.lane.b32.xlu0 %v1370_v29, %s1466_s9  ;;  %v1372_v46 = vpop.eup %1371 }
 0xc16   :  { %v807_v49 = vadd.f32 1.0, %v1372_v46  ;;  %v1374_v34 = vpop.eup %1373 }
 0xc17   :  { %v736_v0 = vadd.f32 1.0, %v1374_v34 }
 0xc18   :  { %1375 = vrcp.f32 %v807_v49  ;;  %v819_v37 = vand.u32 2147483648, %v807_v49  ;;  %vm813_vm14 = vweird.f32 %v807_v49  ;;  %v817_v38 = vand.u32 2147483647, %v807_v49 }
 0xc19   :  { %1377 = vrcp.f32 %v736_v0  ;;  %v748_v53 = vand.u32 2147483648, %v736_v0  ;;  %vm742_vm4 = vweird.f32 %v736_v0  ;;  %v746_v54 = vand.u32 2147483647, %v736_v0 }
 0xc1a   :  { %v820_v41 = vor.u32 1.1754944e-38, %v819_v37  ;;  %vm818_vm3 = vcmp.eq.f32.partialorder %v817_v38, 8.507059e+37 }
 0xc1b   :  { %v749_v59 = vor.u32 1.1754944e-38, %v748_v53  ;;  %vm747_vm7 = vcmp.eq.f32.partialorder %v746_v54, 8.507059e+37 }
 0xc1e   :  { %v1376_v1 = vpop.eup %1375 }
 0xc1f   :  { %v809_v3 = vmul.f32 %v1376_v1, %v807_v49  ;;  %v1378_v4 = vpop.eup %1377  ;;  %vm814_vm13 = vweird.f32 %v1376_v1 }
 0xc20   :  { %v738_v51 = vmul.f32 %v1378_v4, %v736_v0  ;;  %vm815_vm15 = vmor %vm813_vm14, %vm814_vm13  ;;  %vm743_vm2 = vweird.f32 %v1378_v4 }
 0xc21   :  { %v810_v50 = vsub.f32 1.0, %v809_v3  ;;  %vm744_vm5 = vmor %vm742_vm4, %vm743_vm2 }
 0xc22   :  { %v739_v31 = vsub.f32 1.0, %v738_v51 }
 0xc23   :  { %v811_v52 = vmul.f32 %v1376_v1, %v810_v50 }
 0xc24   :  { %v740_v33 = vmul.f32 %v1378_v4, %v739_v31 }
 0xc25   :  { %v812_v32 = vadd.f32 %v1376_v1, %v811_v52 }
 0xc26   :  { %v741_v40 = vadd.f32 %v1378_v4, %v740_v33 }
 0xc27   :  { %v816_v39 = vsel %vm815_vm15, %v1376_v1, %v812_v32 }
 0xc28   :  { %v821_v56 = vsel %vm818_vm3, %v820_v41, %v816_v39  ;;  %v745_v58 = vsel %vm744_vm5, %v1378_v4, %v741_v40 }
 0xc29   :  { %v750_v61 = vsel %vm747_vm7, %v749_v59, %v745_v58  ;;  %v824_v7 = vmul.f32 %v821_v56, %v1777_v13 }
 0xc2a   :  { %v753_v63 = vmul.f32 %v750_v61, %v1781_v17 }
 0xc83   :  { %v827_v55 = vpop.permute.xlu1 %826 }
 0xc84   :  { %v829_v57 = vmul.f32 %v827_v55, %v821_v56 }
 0xc86   :  { %831 = vrot.lane.b32.xlu0 %v829_v57, %s1467_s10 }
 0xc87   :  { %v756_v60 = vpop.permute.xlu0 %755 }
 0xc88   :  { %v758_v62 = vmul.f32 %v756_v60, %v750_v61 }
 0xc8a   :  { %760 = vrot.lane.b32.xlu2 %v758_v62, %s1467_s10 }
 0xce4   :  { %v761_v2 = vpop.permute.xlu2 %760 }
 0xce5   :  { %v1803_v5 = vadd.f32 %v761_v2, %v753_v63 }
 0xce7   :  { %1379 = vtanh.f32 %v1803_v5 }
 0xced   :  { %v1380_v6 = vpop.eup %1379 }
 0xcee   :  { %766 = vrot.lane.b32.xlu1 %v1380_v6, %s1466_s9 }
 0xcf8   :  { %v832_v8 = vpop.permute.xlu0 %831 }
 0xcf9   :  { %v1808_v9 = vadd.f32 %v832_v8, %v824_v7 }
 0xcfb   :  { %1381 = vtanh.f32 %v1808_v9 }
 0xd01   :  { %v1382_v10 = vpop.eup %1381 }
 0xd02   :  { %837 = vrot.lane.b32.xlu2 %v1382_v10, %s1466_s9 }
 0xd5c   :  { %v838_v11 = vpop.permute.xlu2 %837 }
 0xd5d   :  { %v840_v12 = vmul.f32 %v838_v11, %v821_v56  ;;  %v1282_v11 = vld [vmem:[%s1903_s0 + $0xe] sm:$0x3] }
 0xd5f   :  { %842 = vrot.lane.b32.xlu0 %v840_v12, %s1467_s10 }
 0xd60   :  { %v767_v14 = vpop.permute.xlu1 %766 }
 0xd61   :  { %v1813_v15 = vmul.f32 %v767_v14, %v750_v61 }
 0xd63   :  { %846 = vrot.lane.b32.xlu1 %v1813_v15, %s1466_s9 }
 0xdd1   :  { %v843_v16 = vpop.permute.xlu0 %842 }
 0xdd5   :  { %v847_v13 = vpop.permute.xlu1 %846 }
 0xdd6   :  { %v849_v17 = vsel %vm71_vm1, %v843_v16, %v847_v13 }
 0xdd7   :  { %1273 = vmatmul.msk.f32.vlgmr.msra.gmra.mxu3 %vm146_vm6, %v849_v17 }
 0xddf   :  { %1277 = vmatmul.msk.f32.vlgmr.msrb.gmra.mxu3 %vm71_vm1, %v843_v16 }
 0xe5a   :  { %v870_v18 = vpop.f32.mrf.mxu3 }
 0xe5b   :  { %v871_v19 = vadd.f32 %v1660_v48, %v870_v18 }
 0xe5d   :  { %1383 = vtanh.f32 %v871_v19  ;;  %v1274_v26 = vmul.f32 -1.442695, %v871_v19 }
 0xe62   :  { %v940_v21 = vpop.f32.mrf.mxu3 }
 0xe63   :  { %v1384_v23 = vpop.eup %1383  ;;  %v943_v24 = vadd.f32 %v1276_v20, %v940_v21 }
 0xe64   :  { %895 = vrot.lane.b32.xlu2 %v1384_v23, %s1466_s9 }
 0xe65   :  { %1385 = vtanh.f32 %v943_v24  ;;  %v1278_v29 = vmul.f32 -1.442695, %v943_v24 }
 0xe66   :  { %1387 = vpow2.f32 %v1274_v26 }
 0xe6b   :  { %v1386_v25 = vpop.eup %1385 }
 0xe6c   :  { %966 = vrot.lane.b32.xlu0 %v1386_v25, %s1466_s9  ;;  %v1388_v28 = vpop.eup %1387 }
 0xe6d   :  { %v876_v35 = vadd.f32 1.0, %v1388_v28 }
 0xe6f   :  { %1389 = vrcp.f32 %v876_v35  ;;  %v888_v46 = vand.u32 2147483648, %v876_v35  ;;  %vm882_vm9 = vweird.f32 %v876_v35  ;;  %v886_v49 = vand.u32 2147483647, %v876_v35 }
 0xe70   :  { %1391 = vpow2.f32 %v1278_v29 }
 0xe71   :  { %v889_v1 = vor.u32 1.1754944e-38, %v888_v46  ;;  %vm887_vm11 = vcmp.eq.f32.partialorder %v886_v49, 8.507059e+37 }
 0xe75   :  { %v1390_v30 = vpop.eup %1389 }
 0xe76   :  { %v878_v36 = vmul.f32 %v1390_v30, %v876_v35  ;;  %vm883_vm8 = vweird.f32 %v1390_v30  ;;  %v1392_v34 = vpop.eup %1391 }
 0xe77   :  { %vm884_vm10 = vmor %vm882_vm9, %vm883_vm8  ;;  %v947_v3 = vadd.f32 1.0, %v1392_v34 }
 0xe78   :  { %v879_v44 = vsub.f32 1.0, %v878_v36 }
 0xe79   :  { %1393 = vrcp.f32 %v947_v3  ;;  %v959_v38 = vand.u32 2147483648, %v947_v3  ;;  %vm953_vm13 = vweird.f32 %v947_v3  ;;  %v957_v39 = vand.u32 2147483647, %v947_v3 }
 0xe7a   :  { %v880_v45 = vmul.f32 %v1390_v30, %v879_v44 }
 0xe7b   :  { %v960_v41 = vor.u32 1.1754944e-38, %v959_v38  ;;  %vm958_vm15 = vcmp.eq.f32.partialorder %v957_v39, 8.507059e+37 }
 0xe7c   :  { %v881_v27 = vadd.f32 %v1390_v30, %v880_v45 }
 0xe7e   :  { %v885_v0 = vsel %vm884_vm10, %v1390_v30, %v881_v27 }
 0xe7f   :  { %v890_v50 = vsel %vm887_vm11, %v889_v1, %v885_v0  ;;  %v1394_v52 = vpop.eup %1393 }
 0xe80   :  { %v949_v31 = vmul.f32 %v1394_v52, %v947_v3  ;;  %vm954_vm12 = vweird.f32 %v1394_v52  ;;  %v893_v56 = vmul.f32 %v890_v50, %v1803_v5 }
 0xe81   :  { %vm955_vm14 = vmor %vm953_vm13, %vm954_vm12 }
 0xe82   :  { %v950_v32 = vsub.f32 1.0, %v949_v31 }
 0xe84   :  { %v951_v33 = vmul.f32 %v1394_v52, %v950_v32 }
 0xe86   :  { %v952_v37 = vadd.f32 %v1394_v52, %v951_v33 }
 0xe88   :  { %v956_v40 = vsel %vm955_vm14, %v1394_v52, %v952_v37 }
 0xe89   :  { %v961_v54 = vsel %vm958_vm15, %v960_v41, %v956_v40 }
 0xe8a   :  { %v964_v59 = vmul.f32 %v961_v54, %v1808_v9 }
 0xebe   :  { %v896_v4 = vpop.permute.xlu2 %895 }
 0xebf   :  { %v898_v51 = vmul.f32 %v896_v4, %v890_v50 }
 0xec1   :  { %900 = vrot.lane.b32.xlu1 %v898_v51, %s1467_s10 }
 0xede   :  { %v967_v53 = vpop.permute.xlu0 %966 }
 0xedf   :  { %v969_v55 = vmul.f32 %v967_v53, %v961_v54 }
 0xee1   :  { %971 = vrot.lane.b32.xlu2 %v969_v55, %s1467_s10 }
 0xf33   :  { %v901_v57 = vpop.permute.xlu1 %900 }
 0xf34   :  { %v1829_v58 = vadd.f32 %v901_v57, %v893_v56 }
 0xf36   :  { %1395 = vtanh.f32 %v1829_v58 }
 0xf3b   :  { %v972_v60 = vpop.permute.xlu2 %971 }
 0xf3c   :  { %v1396_v61 = vpop.eup %1395  ;;  %v1833_v62 = vadd.f32 %v972_v60, %v964_v59 }
 0xf3d   :  { %906 = vrot.lane.b32.xlu0 %v1396_v61, %s1466_s9 }
 0xf3e   :  { %1397 = vtanh.f32 %v1833_v62 }
 0xf44   :  { %v1398_v63 = vpop.eup %1397 }
 0xf45   :  { %977 = vrot.lane.b32.xlu1 %v1398_v63, %s1466_s9 }
 0xfaf   :  { %v907_v2 = vpop.permute.xlu0 %906 }
 0xfb0   :  { %v1838_v5 = vmul.f32 %v907_v2, %v890_v50 }
 0xfb2   :  { %986 = vrot.lane.b32.xlu0 %v1838_v5, %s1466_s9 }
 0xfb7   :  { %v978_v6 = vpop.permute.xlu1 %977 }
 0xfb8   :  { %v980_v7 = vmul.f32 %v978_v6, %v961_v54  ;;  %v1423_v6 = vld [vmem:[%s1906_s3] ss:$0 sm:$0xff]  ;;  %s1251_s3 = sld [smem:[#allocation7 + $0x1]] }
 0xfba   :  { %982 = vrot.lane.b32.xlu2 %v980_v7, %s1467_s10 }
0x1014   :  { %v983_v8 = vpop.permute.xlu2 %982 }
0x1015   :  { %1283 = vmatmul.msk.f32.vlgmr.msra.gmra.mxu0 %vm71_vm1, %v983_v8 }
0x1024   :  { %v987_v9 = vpop.permute.xlu0 %986 }
0x1025   :  { %v989_v10 = vsel %vm71_vm1, %v983_v8, %v987_v9  ;;  %v212_v9 = vstv %s211_s19 }
0x1026   :  { %1279 = vmatmul.msk.f32.vlgmr.msrb.gmra.mxu2 %vm146_vm6, %v989_v10  ;;  %v213_v10 = vmul.f32 %v212_v9, %v1676_v43 }
0x1092   :  { %v1080_v12 = vpop.f32.mrf.mxu0 }
0x1093   :  { %v1083_v14 = vadd.f32 %v1282_v11, %v1080_v12  ;;  %v632_v11 = vstv %s1263_s20 }
0x1094   :  { %v633_v12 = vmul.f32 %v632_v11, %v1787_v22 }
0x1095   :  { %1399 = vtanh.f32 %v1083_v14  ;;  %v1284_v19 = vmul.f32 -1.442695, %v1083_v14  ;;  %v1052_v14 = vstv %s1281_s21 }
0x109b   :  { %v1400_v16 = vpop.eup %1399 }
0x109c   :  { %1106 = vrot.lane.b32.xlu2 %v1400_v16, %s1466_s9 }
0x10a9   :  { %v1010_v13 = vpop.f32.mrf.mxu2 }
0x10aa   :  { %v1011_v17 = vadd.f32 %v1660_v48, %v1010_v13 }
0x10ac   :  { %1401 = vtanh.f32 %v1011_v17  ;;  %v1280_v27 = vmul.f32 -1.442695, %v1011_v17 }
0x10ad   :  { %1403 = vpow2.f32 %v1284_v19 }
0x10b2   :  { %v1402_v18 = vpop.eup %1401 }
0x10b3   :  { %1035 = vrot.lane.b32.xlu1 %v1402_v18, %s1466_s9  ;;  %v1404_v20 = vpop.eup %1403 }
0x10b4   :  { %v1087_v21 = vadd.f32 1.0, %v1404_v20 }
0x10b6   :  { %1405 = vrcp.f32 %v1087_v21  ;;  %v1099_v35 = vand.u32 2147483648, %v1087_v21  ;;  %vm1093_vm3 = vweird.f32 %v1087_v21  ;;  %v1097_v30 = vand.u32 2147483647, %v1087_v21 }
0x10b7   :  { %1407 = vpow2.f32 %v1280_v27 }
0x10b8   :  { %v1100_v36 = vor.u32 1.1754944e-38, %v1099_v35  ;;  %vm1098_vm5 = vcmp.eq.f32.partialorder %v1097_v30, 8.507059e+37 }
0x10bc   :  { %v1406_v23 = vpop.eup %1405 }
0x10bd   :  { %v1089_v24 = vmul.f32 %v1406_v23, %v1087_v21  ;;  %vm1094_vm2 = vweird.f32 %v1406_v23  ;;  %v1408_v46 = vpop.eup %1407 }
0x10be   :  { %vm1095_vm4 = vmor %vm1093_vm3, %vm1094_vm2  ;;  %v1016_v49 = vadd.f32 1.0, %v1408_v46 }
0x10bf   :  { %v1090_v25 = vsub.f32 1.0, %v1089_v24 }
0x10c0   :  { %1409 = vrcp.f32 %v1016_v49  ;;  %v1028_v50 = vand.u32 2147483648, %v1016_v49  ;;  %vm1022_vm8 = vweird.f32 %v1016_v49  ;;  %v1026_v51 = vand.u32 2147483647, %v1016_v49 }
0x10c1   :  { %v1091_v26 = vmul.f32 %v1406_v23, %v1090_v25 }
0x10c2   :  { %v1029_v31 = vor.u32 1.1754944e-38, %v1028_v50  ;;  %vm1027_vm10 = vcmp.eq.f32.partialorder %v1026_v51, 8.507059e+37  ;;  %v69_v51 = vld [vmem:[#allocation10] sm:$0x3] }
0x10c3   :  { %v1092_v28 = vadd.f32 %v1406_v23, %v1091_v26 }
0x10c5   :  { %v1096_v48 = vsel %vm1095_vm4, %v1406_v23, %v1092_v28 }
0x10c6   :  { %v1101_v29 = vsel %vm1098_vm5, %v1100_v36, %v1096_v48  ;;  %v1410_v34 = vpop.eup %1409  ;;  %v352_v48 = vstv %s1251_s3 }
0x10c7   :  { %v1018_v0 = vmul.f32 %v1410_v34, %v1016_v49  ;;  %vm1023_vm7 = vweird.f32 %v1410_v34  ;;  %v1104_v38 = vmul.f32 %v1101_v29, %v1833_v62  ;;  %v353_v36 = vmul.f32 %v352_v48, %v1719_v47 }
0x10c8   :  { %vm1024_vm9 = vmor %vm1022_vm8, %vm1023_vm7 }
0x10c9   :  { %v1019_v1 = vsub.f32 1.0, %v1018_v0  ;;  %v912_v0 = vstv %s1275_s24 }
0x10cb   :  { %v1020_v3 = vmul.f32 %v1410_v34, %v1019_v1 }
0x10cd   :  { %v1021_v4 = vadd.f32 %v1410_v34, %v1020_v3  ;;  %v1192_v3 = vstv %s1287_s26 }
0x10cf   :  { %v1025_v52 = vsel %vm1024_vm9, %v1410_v34, %v1021_v4  ;;  %v492_v34 = vstv %s1257_s23 }
0x10d0   :  { %v1030_v33 = vsel %vm1027_vm10, %v1029_v31, %v1025_v52  ;;  %v493_v47 = vmul.f32 %v492_v34, %v1757_v42 }
0x10d1   :  { %v1033_v53 = vmul.f32 %v1030_v33, %v1829_v58 }
0x10f6   :  { %v1107_v44 = vpop.permute.xlu2 %1106 }
0x10f7   :  { %v1109_v45 = vmul.f32 %v1107_v44, %v1101_v29  ;;  %v772_v44 = vstv %s1269_s22 }
0x10f9   :  { %1111 = vrot.lane.b32.xlu1 %v1109_v45, %s1467_s10 }
0x1125   :  { %v1036_v32 = vpop.permute.xlu1 %1035 }
0x1126   :  { %v1038_v37 = vmul.f32 %v1036_v32, %v1030_v33 }
0x1128   :  { %1040 = vrot.lane.b32.xlu0 %v1038_v37, %s1467_s10 }
0x116b   :  { %v1112_v39 = vpop.permute.xlu1 %1111 }
0x116c   :  { %v1855_v40 = vadd.f32 %v1112_v39, %v1104_v38 }
0x116e   :  { %1411 = vtanh.f32 %v1855_v40 }
0x1174   :  { %v1412_v41 = vpop.eup %1411 }
0x1175   :  { %1117 = vrot.lane.b32.xlu0 %v1412_v41, %s1466_s9 }
0x119a   :  { %v1041_v54 = vpop.permute.xlu0 %1040 }
0x119b   :  { %v1860_v55 = vadd.f32 %v1041_v54, %v1033_v53 }
0x119d   :  { %1413 = vtanh.f32 %v1860_v55 }
0x11a3   :  { %v1414_v56 = vpop.eup %1413 }
0x11a4   :  { %1046 = vrot.lane.b32.xlu2 %v1414_v56, %s1466_s9 }
0x11e7   :  { %v1118_v57 = vpop.permute.xlu0 %1117 }
0x11e8   :  { %v1120_v59 = vmul.f32 %v1118_v57, %v1101_v29  ;;  %v773_v29 = vmul.f32 %v772_v44, %v1813_v15  ;;  %v913_v15 = vmul.f32 %v912_v0, %v1838_v5 }
0x11ea   :  { %1122 = vrot.lane.b32.xlu1 %v1120_v59, %s1467_s10 }
0x11fe   :  { %v1047_v60 = vpop.permute.xlu2 %1046 }
0x11ff   :  { %v1049_v61 = vmul.f32 %v1047_v60, %v1030_v33 }
0x1201   :  { %1126 = vrot.lane.b32.xlu2 %v1049_v61, %s1466_s9  ;;  %v1053_v16 = vmul.f32 %v1052_v14, %v1049_v61 }
0x125b   :  { %v1127_v62 = vpop.permute.xlu2 %1126 }
0x125c   :  { %v1123_v63 = vpop.permute.xlu1 %1122 }
0x125d   :  { %v1129_v58 = vsel %vm71_vm1, %v1123_v63, %v1127_v62  ;;  %1200 = vst.msk [vmem:[#allocation2] sm:$0x3] %vm42_vm0, %v1123_v63  ;;  %v1222_v62 = vstv %s1908_s5 }
0x125e   :  { %1285 = vmatmul.msk.f32.vlgmr.msra.gmra.mxu1 %vm146_vm6, %v1129_v58 }
0x12db   :  { %v1150_v2 = vpop.f32.mrf.mxu1 }
0x12dc   :  { %v1151_v7 = vadd.f32 %v1423_v6, %v1150_v2 }
0x12de   :  { %1415 = vtanh.f32 %v1151_v7  ;;  %v1286_v13 = vmul.f32 -1.442695, %v1151_v7 }
0x12e0   :  { %1417 = vpow2.f32 %v1286_v13 }
0x12e4   :  { %v1416_v8 = vpop.eup %1415 }
0x12e5   :  { %1175 = vrot.lane.b32.xlu0 %v1416_v8, %s1466_s9 }
0x12e6   :  { %v1418_v17 = vpop.eup %1417 }
0x12e7   :  { %v1156_v18 = vadd.f32 1.0, %v1418_v17 }
0x12e9   :  { %1419 = vrcp.f32 %v1156_v18  ;;  %v1168_v24 = vand.u32 2147483648, %v1156_v18  ;;  %vm1162_vm6 = vweird.f32 %v1156_v18  ;;  %v1166_v22 = vand.u32 2147483647, %v1156_v18 }
0x12eb   :  { %v1169_v26 = vor.u32 1.1754944e-38, %v1168_v24  ;;  %vm1167_vm12 = vcmp.eq.f32.partialorder %v1166_v22, 8.507059e+37 }
0x12ed   :  { %215 = vrot.lane.b32.xlu0 %v213_v10, %s1467_s10 }
0x12ef   :  { %v1420_v19 = vpop.eup %1419 }
0x12f0   :  { %v1158_v20 = vmul.f32 %v1420_v19, %v1156_v18  ;;  %vm1163_vm1 = vweird.f32 %v1420_v19 }
0x12f1   :  { %vm1164_vm11 = vmor %vm1162_vm6, %vm1163_vm1 }
0x12f2   :  { %v1159_v43 = vsub.f32 1.0, %v1158_v20 }
0x12f4   :  { %v1160_v21 = vmul.f32 %v1420_v19, %v1159_v43 }
0x12f5   :  { %635 = vrot.lane.b32.xlu0 %v633_v12, %s1467_s10 }
0x12f6   :  { %v1161_v23 = vadd.f32 %v1420_v19, %v1160_v21 }
0x12f8   :  { %v1165_v25 = vsel %vm1164_vm11, %v1420_v19, %v1161_v23 }
0x12f9   :  { %v1170_v35 = vsel %vm1167_vm12, %v1169_v26, %v1165_v25 }
0x12fa   :  { %v1173_v45 = vmul.f32 %v1170_v35, %v1860_v55 }
0x12fd   :  { %1055 = vrot.lane.b32.xlu0 %v1053_v16, %s1467_s10 }
0x1357   :  { %v1176_v28 = vpop.permute.xlu0 %1175 }
0x1358   :  { %v1178_v30 = vmul.f32 %v1176_v28, %v1170_v35 }
0x135a   :  { %1180 = vrot.lane.b32.xlu1 %v1178_v30, %s1467_s10 }
0x135f   :  { %v216_v1 = vpop.permute.xlu0 %215 }
0x1360   :  { %v218_v31 = vadd.f32 %v216_v1, %v69_v51 }
0x1362   :  { %355 = vrot.lane.b32.xlu1 %v353_v36, %s1467_s10 }
0x1367   :  { %v636_v37 = vpop.permute.xlu0 %635 }
0x136a   :  { %775 = vrot.lane.b32.xlu1 %v773_v29, %s1467_s10 }
0x136f   :  { %v1056_v55 = vpop.permute.xlu0 %1055 }
0x13cc   :  { %v1181_v27 = vpop.permute.xlu1 %1180 }
0x13cd   :  { %v1183_v46 = vadd.f32 %v1181_v27, %v1173_v45 }
0x13cf   :  { %1421 = vtanh.f32 %v1183_v46 }
0x13d4   :  { %v356_v42 = vpop.permute.xlu1 %355 }
0x13d5   :  { %v1422_v49 = vpop.eup %1421  ;;  %v358_v32 = vadd.f32 %v356_v42, %v218_v31 }
0x13d6   :  { %1186 = vrot.lane.b32.xlu2 %v1422_v49, %s1466_s9 }
0x13dc   :  { %v776_v39 = vpop.permute.xlu1 %775 }
0x13de   :  { %495 = vrot.lane.b32.xlu2 %v493_v47, %s1467_s10 }
0x13e6   :  { %915 = vrot.lane.b32.xlu2 %v913_v15, %s1467_s10 }
0x13ee   :  { %1202 = vrot.lane.b32.xlu2 %v1855_v40, %s1468_s25 }
0x1430   :  { %v1187_v4 = vpop.permute.xlu2 %1186 }
0x1431   :  { %v1189_v50 = vmul.f32 %v1187_v4, %v1170_v35 }
0x1433   :  { %v1193_v52 = vmul.f32 %v1192_v3, %v1189_v50  ;;  %1207 = vrot.lane.b32.xlu0 %v1189_v50, %s1467_s10 }
0x1435   :  { %1195 = vrot.lane.b32.xlu1 %v1193_v52, %s1467_s10 }
0x1438   :  { %v496_v5 = vpop.permute.xlu2 %495 }
0x1439   :  { %v498_v33 = vadd.f32 %v496_v5, %v358_v32 }
0x143b   :  { %v638_v38 = vadd.f32 %v636_v37, %v498_v33 }
0x143d   :  { %1212 = vrot.lane.b32.xlu1 %v1183_v46, %s1468_s25  ;;  %v778_v40 = vadd.f32 %v776_v39, %v638_v38 }
0x1440   :  { %v916_v41 = vpop.permute.xlu2 %915 }
0x1441   :  { %v918_v53 = vadd.f32 %v916_v41, %v778_v40 }
0x1443   :  { %v1058_v57 = vadd.f32 %v1056_v55, %v918_v53 }
0x1448   :  { %v1203_v54 = vpop.permute.xlu2 %1202 }
0x1449   :  { %1205 = vst.msk [vmem:[#allocation3] sm:$0x3] %vm42_vm0, %v1203_v54 }
0x14a5   :  { %v1208_v56 = vpop.permute.xlu0 %1207 }
0x14a6   :  { %1210 = vst.msk [vmem:[#allocation4] sm:$0x3] %vm42_vm0, %v1208_v56 }
0x14a7   :  { %v1196_v59 = vpop.permute.xlu1 %1195 }
0x14a8   :  { %v1198_v60 = vadd.f32 %v1196_v59, %v1058_v57 }
0x14aa   :  { %1216 = vst.msk [vmem:[#allocation10] sm:$0x3] %vm42_vm0, %v1198_v60 }
0x14af   :  { %v1213_v61 = vpop.permute.xlu1 %1212 }
0x14b0   :  { %1215 = vst.msk [vmem:[#allocation5] sm:$0x3] %vm42_vm0, %v1213_v61 }
0x14b1   :  { %v1220_v63 = vld [vmem:[#allocation10] sm:$0x3] }
0x14b2   :  { %v1223_v58 = vadd.f32 %v1222_v62, %v1220_v63 }
0x14b4   :  { %1224 = vst.msk [vmem:[#allocation10] sm:$0x3] %vm42_vm0, %v1223_v58 }
0x14b5   :  { %1235 = dma.vmem_to_hbm [thread:$0]  %s1231_s27, 32, %s1233_s29, [#allocation8]  }
0x14b6   :  { %1462 = dma.done.wait [#allocation8], 32  }
0x14b7   :  { %1463 = vsyncadd [#allocation8], 4294967264 }
0x14b8   :  { %1240 = vsyncpa [#allocation8], 1 }
0x14b9   :  { %1241 = vsyncpa [#allocation9], 1 }

</bundles_post_ra>
